<compile_context>
chip_gen: v5e
topology: v5e:2x2
jax: 0.10.0
libtpu: 0.0.40
codegen_flags: <defaults>
</compile_context>

<pallas_src>
import functools

import jax
import jax.numpy as jnp
import numpy as np
from jax.experimental import pallas as pl
from jax.experimental.pallas import tpu as pltpu

IMG_K = 14 * 14          # 196 real image features
IMG_KP = 256             # padded (lane-aligned) image features
MAX_TILE = 256           # batch rows per grid step (multiple of 8)


def _round_up(n, m):
    return ((n + m - 1) // m) * m


# ---------------------------------------------------------------------------
# Single fused kernel: whole forward pass for one batch tile.
# ---------------------------------------------------------------------------
def _fused_kernel(x1_ref, x2_ref,
                  w1_ref, b1_ref, w2_ref, b2_ref,
                  wf1_ref, bf1_ref, wf2_ref, bf2_ref,
                  wf3a_ref, wf3b_ref, bf3_ref,
                  wf4_ref, bf4_ref, wf5_ref, bf5_ref,
                  o_ref):
    f32 = jnp.float32
    tb = x1_ref.shape[0]

    # Stack both images along the row (batch) axis -> one set of branch matmuls.
    x = jnp.concatenate([x1_ref[...], x2_ref[...]], axis=0)          # (2*tb, 256)

    # conv1 (dense form) + tanh.
    a1 = jnp.tanh(jnp.dot(x, w1_ref[...], preferred_element_type=f32)
                  + b1_ref[...])                                      # (2*tb, 1600)
    # avg-pool + conv2 (folded) + tanh.
    h2 = jnp.tanh(jnp.dot(a1, w2_ref[...], preferred_element_type=f32)
                  + b2_ref[...])                                      # (2*tb, 128)
    # fc1 + relu.
    h3 = jnp.maximum(jnp.dot(h2, wf1_ref[...], preferred_element_type=f32)
                     + bf1_ref[...], 0.0)                             # (2*tb, 128)
    # fc2 + log_softmax (N = 10, unpadded, so the reduction is exact).
    logits = (jnp.dot(h3, wf2_ref[...], preferred_element_type=f32)
              + bf2_ref[...])                                         # (2*tb, 10)
    m = jnp.max(logits, axis=-1, keepdims=True)
    lse = m + jnp.log(jnp.sum(jnp.exp(logits - m), axis=-1, keepdims=True))
    ls = logits - lse                                                 # (2*tb, 10)

    # "concat(out1, out2)" + fc3 expressed as two matmuls on the row halves.
    ls1 = ls[:tb]                                                     # (tb, 10)
    ls2 = ls[tb:]                                                     # (tb, 10)
    h4 = jnp.maximum(
        jnp.dot(ls1, wf3a_ref[...], preferred_element_type=f32)
        + jnp.dot(ls2, wf3b_ref[...], preferred_element_type=f32)
        + bf3_ref[...], 0.0)                                          # (tb, 128)
    # fc4 + relu.
    h5 = jnp.maximum(jnp.dot(h4, wf4_ref[...], preferred_element_type=f32)
                     + bf4_ref[...], 0.0)                             # (tb, 128)
    # fc5 + sigmoid.
    z = jnp.dot(h5, wf5_ref[...], preferred_element_type=f32) + bf5_ref[...]
    o_ref[...] = jax.nn.sigmoid(z)                                    # (tb, 1)


# ---------------------------------------------------------------------------
# One-time weight preprocessing (plain JAX, outside the kernel).
# ---------------------------------------------------------------------------
def prepare_weights(params):
    f32 = jnp.float32
    w1 = params["conv1_w"].astype(f32)            # (16, 1, 5, 5)
    b1 = params["conv1_b"].astype(f32)            # (16,)
    w2 = params["conv2_w"].astype(f32)            # (120, 16, 5, 5)
    b2 = params["conv2_b"].astype(f32)            # (120,)

    # conv1 as a dense (IMG_KP, 1600) matrix over the zero-padded flat image:
    #   out[(i*10+j)*16 + oc] = sum_{ki,kj} w1[oc,0,ki,kj] * img[(i+ki)*14 + (j+kj)]
    i, j, ki, kj, oc = jnp.meshgrid(jnp.arange(10), jnp.arange(10),
                                    jnp.arange(5), jnp.arange(5),
                                    jnp.arange(16), indexing="ij")
    rows = (i + ki) * 14 + (j + kj)
    cols = (i * 10 + j) * 16 + oc
    vals = w1[:, 0][oc, ki, kj]                   # (10,10,5,5,16)
    w1_full = (jnp.zeros((IMG_KP, 1600), f32)
               .at[rows.ravel(), cols.ravel()].set(vals.ravel()))
    b1_full = jnp.tile(b1, 100).reshape(1, 1600)

    # 2x2 avg-pool folded into conv2 (both linear; the tanh sits before both):
    #   w2_eff[(i*10+j)*16 + c, o] = 0.25 * w2[o, c, i//2, j//2]
    ii, jj, cc = jnp.meshgrid(jnp.arange(10), jnp.arange(10), jnp.arange(16),
                              indexing="ij")
    w2_eff = 0.25 * jnp.transpose(w2[:, cc, ii // 2, jj // 2],
                                  (1, 2, 3, 0)).reshape(1600, 120)
    w2_p = jnp.zeros((1600, 128), f32).at[:, :120].set(w2_eff)
    b2_p = jnp.zeros((1, 128), f32).at[0, :120].set(b2)

    def pad2(w, b, kp, np_):
        wp = jnp.zeros((kp, np_), f32).at[:w.shape[0], :w.shape[1]].set(w)
        bp = jnp.zeros((1, np_), f32).at[0, :b.shape[0]].set(b)
        return wp, bp

    wf1_p, bf1_p = pad2(params["fc1_w"].T.astype(f32),
                        params["fc1_b"].astype(f32), 128, 128)
    wf2_p = jnp.zeros((128, 10), f32).at[:82, :].set(params["fc2_w"].T.astype(f32))
    bf2 = params["fc2_b"].astype(f32).reshape(1, 10)

    wf3 = params["fc3_w"].T.astype(f32)           # (20, 100)
    wf3a = jnp.zeros((10, 128), f32).at[:, :100].set(wf3[:10])
    wf3b = jnp.zeros((10, 128), f32).at[:, :100].set(wf3[10:])
    bf3_p = jnp.zeros((1, 128), f32).at[0, :100].set(params["fc3_b"].astype(f32))

    wf4_p, bf4_p = pad2(params["fc4_w"].T.astype(f32),
                        params["fc4_b"].astype(f32), 128, 128)
    wf5_p = jnp.zeros((128, 1), f32).at[:100, :].set(params["fc5_w"].T.astype(f32))
    bf5 = params["fc5_b"].astype(f32).reshape(1, 1)

    return (w1_full, b1_full, w2_p, b2_p, wf1_p, bf1_p, wf2_p, bf2,
            wf3a, wf3b, bf3_p, wf4_p, bf4_p, wf5_p, bf5)


# ---------------------------------------------------------------------------
# Forward pass: one pallas_call over batch tiles.
# ---------------------------------------------------------------------------
def forward(prep, im1, im2):
    f32 = jnp.float32
    x1 = im1.reshape(-1, IMG_K).astype(f32)
    x2 = im2.reshape(-1, IMG_K).astype(f32)
    B = x1.shape[0]

    tb = min(MAX_TILE, _round_up(B, 8))
    Bp = _round_up(B, tb)
    x1p = jnp.zeros((Bp, IMG_KP), f32).at[:B, :IMG_K].set(x1)
    x2p = jnp.zeros((Bp, IMG_KP), f32).at[:B, :IMG_K].set(x2)

    x_spec = pl.BlockSpec((tb, IMG_KP), lambda i: (i, 0))
    weight_specs = [pl.BlockSpec(w.shape, lambda i: (0, 0)) for w in prep]

    out = pl.pallas_call(
        _fused_kernel,
        out_shape=jax.ShapeDtypeStruct((Bp, 1), f32),
        grid=(Bp // tb,),
        in_specs=[x_spec, x_spec] + weight_specs,
        out_specs=pl.BlockSpec((tb, 1), lambda i: (i, 0)),
        compiler_params=pltpu.CompilerParams(
            dimension_semantics=("parallel",),
            vmem_limit_bytes=48 * 1024 * 1024),
    )(x1p, x2p, *prep)
    return out[:B]


# ---------------------------------------------------------------------------
# Parameter init (deterministic, PyTorch-default-style uniform bounds).
# ---------------------------------------------------------------------------
def init_params(key):
    def uni(k, shape, fan_in):
        bound = 1.0 / np.sqrt(fan_in)
        return jax.random.uniform(k, shape, jnp.float32, -bound, bound)

    ks = jax.random.split(key, 14)
    return {
        "conv1_w": uni(ks[0], (16, 1, 5, 5), 25),
        "conv1_b": uni(ks[1], (16,), 25),
        "conv2_w": uni(ks[2], (120, 16, 5, 5), 16 * 25),
        "conv2_b": uni(ks[3], (120,), 16 * 25),
        "fc1_w": uni(ks[4], (82, 120), 120),
        "fc1_b": uni(ks[5], (82,), 120),
        "fc2_w": uni(ks[6], (10, 82), 82),
        "fc2_b": uni(ks[7], (10,), 82),
        "fc3_w": uni(ks[8], (100, 20), 20),
        "fc3_b": uni(ks[9], (100,), 20),
        "fc4_w": uni(ks[10], (100, 100), 100),
        "fc4_b": uni(ks[11], (100,), 100),
        "fc5_w": uni(ks[12], (1, 100), 100),
        "fc5_b": uni(ks[13], (1,), 100),
    }


# ---------------------------------------------------------------------------
# Pure-JAX reference (mirrors the PyTorch forward exactly) for verification.
# ---------------------------------------------------------------------------
def reference_forward(params, im1, im2):
    def branch(x):
        x = x.reshape(-1, 1, 14, 14)
        c1 = jax.lax.conv_general_dilated(
            x, params["conv1_w"], (1, 1), "VALID",
            dimension_numbers=("NCHW", "OIHW", "NCHW"))
        c1 = jnp.tanh(c1 + params["conv1_b"][None, :, None, None])
        pooled = c1.reshape(c1.shape[0], 16, 5, 2, 5, 2).mean(axis=(3, 5))
        c2 = jax.lax.conv_general_dilated(
            pooled, params["conv2_w"], (1, 1), "VALID",
            dimension_numbers=("NCHW", "OIHW", "NCHW"))
        c2 = jnp.tanh(c2 + params["conv2_b"][None, :, None, None])
        h = c2.reshape(c2.shape[0], 120)
        h = jnp.maximum(h @ params["fc1_w"].T + params["fc1_b"], 0.0)
        logits = h @ params["fc2_w"].T + params["fc2_b"]
        return jax.nn.log_softmax(logits, axis=1)

    pair = jnp.concatenate([branch(im1), branch(im2)], axis=1)
    h = jnp.maximum(pair @ params["fc3_w"].T + params["fc3_b"], 0.0)
    h = jnp.maximum(h @ params["fc4_w"].T + params["fc4_b"], 0.0)
    return jax.nn.sigmoid(h @ params["fc5_w"].T + params["fc5_b"])


# TODO(synk): training utilities (fit/predict/update_lr) are host-side loops in
# the original module and are intentionally not ported to Pallas.

if __name__ == "__main__":
    key = jax.random.PRNGKey(0)
    pkey, k1, k2 = jax.random.split(key, 3)
    params = init_params(pkey)
    prep = prepare_weights(params)

    B = 4
    im1 = jax.random.normal(k1, (B, 14, 14), jnp.float32)
    im2 = jax.random.normal(k2, (B, 14, 14), jnp.float32)

    out = jax.jit(forward)(prep, im1, im2)
    out = jax.block_until_ready(out)
    assert out.shape == (B, 1)

    ref = reference_forward(params, im1, im2)
    np.testing.assert_allclose(np.asarray(out), np.asarray(ref),
                               rtol=1e-4, atol=1e-4)
    print("KERNEL_OK")
</pallas_src>

<mosaic_0001>
module attributes {stable_mosaic.version = 11 : i64} {
  func.func @_fused_kernel(%arg0: i32, %arg1: memref<8x256xf32, #tpu.memory_space<vmem>>, %arg2: memref<8x256xf32, #tpu.memory_space<vmem>>, %arg3: memref<256x1600xf32, #tpu.memory_space<vmem>>, %arg4: memref<1x1600xf32, #tpu.memory_space<vmem>>, %arg5: memref<1600x128xf32, #tpu.memory_space<vmem>>, %arg6: memref<1x128xf32, #tpu.memory_space<vmem>>, %arg7: memref<128x128xf32, #tpu.memory_space<vmem>>, %arg8: memref<1x128xf32, #tpu.memory_space<vmem>>, %arg9: memref<128x10xf32, #tpu.memory_space<vmem>>, %arg10: memref<1x10xf32, #tpu.memory_space<vmem>>, %arg11: memref<10x128xf32, #tpu.memory_space<vmem>>, %arg12: memref<10x128xf32, #tpu.memory_space<vmem>>, %arg13: memref<1x128xf32, #tpu.memory_space<vmem>>, %arg14: memref<128x128xf32, #tpu.memory_space<vmem>>, %arg15: memref<1x128xf32, #tpu.memory_space<vmem>>, %arg16: memref<128x1xf32, #tpu.memory_space<vmem>>, %arg17: memref<1x1xf32, #tpu.memory_space<vmem>>, %arg18: memref<8x1xf32, #tpu.memory_space<vmem>>) attributes {dimension_semantics = [#tpu.dimension_semantics<parallel>], iteration_bounds = array<i64: 1>, scalar_prefetch = 0 : i64, scratch_operands = 0 : i64, tpu.core_type = #tpu.core_type<tc>, window_params = [{transform_indices = @transform_0, window_bounds = array<i64: 8, 256>}, {transform_indices = @transform_1, window_bounds = array<i64: 8, 256>}, {pipeline_mode = #tpu.pipeline_mode<synchronous>, transform_indices = @transform_2, window_bounds = array<i64: 256, 1600>}, {pipeline_mode = #tpu.pipeline_mode<synchronous>, transform_indices = @transform_3, window_bounds = array<i64: 1, 1600>}, {pipeline_mode = #tpu.pipeline_mode<synchronous>, transform_indices = @transform_4, window_bounds = array<i64: 1600, 128>}, {pipeline_mode = #tpu.pipeline_mode<synchronous>, transform_indices = @transform_5, window_bounds = array<i64: 1, 128>}, {pipeline_mode = #tpu.pipeline_mode<synchronous>, transform_indices = @transform_6, window_bounds = array<i64: 128, 128>}, {pipeline_mode = #tpu.pipeline_mode<synchronous>, transform_indices = @transform_7, window_bounds = array<i64: 1, 128>}, {pipeline_mode = #tpu.pipeline_mode<synchronous>, transform_indices = @transform_8, window_bounds = array<i64: 128, 10>}, {pipeline_mode = #tpu.pipeline_mode<synchronous>, transform_indices = @transform_9, window_bounds = array<i64: 1, 10>}, {pipeline_mode = #tpu.pipeline_mode<synchronous>, transform_indices = @transform_10, window_bounds = array<i64: 10, 128>}, {pipeline_mode = #tpu.pipeline_mode<synchronous>, transform_indices = @transform_11, window_bounds = array<i64: 10, 128>}, {pipeline_mode = #tpu.pipeline_mode<synchronous>, transform_indices = @transform_12, window_bounds = array<i64: 1, 128>}, {pipeline_mode = #tpu.pipeline_mode<synchronous>, transform_indices = @transform_13, window_bounds = array<i64: 128, 128>}, {pipeline_mode = #tpu.pipeline_mode<synchronous>, transform_indices = @transform_14, window_bounds = array<i64: 1, 128>}, {pipeline_mode = #tpu.pipeline_mode<synchronous>, transform_indices = @transform_15, window_bounds = array<i64: 128, 1>}, {pipeline_mode = #tpu.pipeline_mode<synchronous>, transform_indices = @transform_16, window_bounds = array<i64: 1, 1>}, {transform_indices = @transform_17, window_bounds = array<i64: 8, 1>}]} {
    %c0 = arith.constant 0 : index
    %c0_0 = arith.constant 0 : index
    %0 = vector.load %arg1[%c0, %c0_0] : memref<8x256xf32, #tpu.memory_space<vmem>>, vector<8x256xf32>
    %c0_1 = arith.constant 0 : index
    %c0_2 = arith.constant 0 : index
    %1 = vector.load %arg2[%c0_1, %c0_2] : memref<8x256xf32, #tpu.memory_space<vmem>>, vector<8x256xf32>
    %2 = tpu.concatenate %0, %1 in 0 : vector<8x256xf32>, vector<8x256xf32> -> vector<16x256xf32>
    %c0_3 = arith.constant 0 : index
    %c0_4 = arith.constant 0 : index
    %3 = vector.load %arg3[%c0_3, %c0_4] : memref<256x1600xf32, #tpu.memory_space<vmem>>, vector<256x1600xf32>
    %cst = arith.constant dense<0.000000e+00> : vector<16x1600xf32>
    %4 = tpu.matmul %2, %3, %cst {dimension_numbers = #tpu.dot_dimension_numbers<[1], [0], [0], [1], [0, 0, 1, 1], [], []>} : vector<16x256xf32>, vector<256x1600xf32>, vector<16x1600xf32> -> vector<16x1600xf32>
    %c0_5 = arith.constant 0 : index
    %c0_6 = arith.constant 0 : index
    %5 = vector.load %arg4[%c0_5, %c0_6] : memref<1x1600xf32, #tpu.memory_space<vmem>>, vector<1x1600xf32>
    %6 = vector.broadcast %5 : vector<1x1600xf32> to vector<16x1600xf32>
    %7 = arith.addf %4, %6 : vector<16x1600xf32>
    %8 = math.tanh %7 : vector<16x1600xf32>
    %c0_7 = arith.constant 0 : index
    %c0_8 = arith.constant 0 : index
    %9 = vector.load %arg5[%c0_7, %c0_8] : memref<1600x128xf32, #tpu.memory_space<vmem>>, vector<1600x128xf32>
    %cst_9 = arith.constant dense<0.000000e+00> : vector<16x128xf32>
    %10 = tpu.matmul %8, %9, %cst_9 {dimension_numbers = #tpu.dot_dimension_numbers<[1], [0], [0], [1], [0, 0, 1, 1], [], []>} : vector<16x1600xf32>, vector<1600x128xf32>, vector<16x128xf32> -> vector<16x128xf32>
    %c0_10 = arith.constant 0 : index
    %c0_11 = arith.constant 0 : index
    %11 = vector.load %arg6[%c0_10, %c0_11] : memref<1x128xf32, #tpu.memory_space<vmem>>, vector<1x128xf32>
    %12 = vector.broadcast %11 : vector<1x128xf32> to vector<16x128xf32>
    %13 = arith.addf %10, %12 : vector<16x128xf32>
    %14 = math.tanh %13 : vector<16x128xf32>
    %c0_12 = arith.constant 0 : index
    %c0_13 = arith.constant 0 : index
    %15 = vector.load %arg7[%c0_12, %c0_13] : memref<128x128xf32, #tpu.memory_space<vmem>>, vector<128x128xf32>
    %cst_14 = arith.constant dense<0.000000e+00> : vector<16x128xf32>
    %16 = tpu.matmul %14, %15, %cst_14 {dimension_numbers = #tpu.dot_dimension_numbers<[1], [0], [0], [1], [0, 0, 1, 1], [], []>} : vector<16x128xf32>, vector<128x128xf32>, vector<16x128xf32> -> vector<16x128xf32>
    %c0_15 = arith.constant 0 : index
    %c0_16 = arith.constant 0 : index
    %17 = vector.load %arg8[%c0_15, %c0_16] : memref<1x128xf32, #tpu.memory_space<vmem>>, vector<1x128xf32>
    %18 = vector.broadcast %17 : vector<1x128xf32> to vector<16x128xf32>
    %19 = arith.addf %16, %18 : vector<16x128xf32>
    %cst_17 = arith.constant 0.000000e+00 : f32
    %20 = vector.broadcast %cst_17 : f32 to vector<16x128xf32>
    %21 = arith.maximumf %19, %20 : vector<16x128xf32>
    %c0_18 = arith.constant 0 : index
    %c0_19 = arith.constant 0 : index
    %22 = vector.load %arg9[%c0_18, %c0_19] : memref<128x10xf32, #tpu.memory_space<vmem>>, vector<128x10xf32>
    %cst_20 = arith.constant dense<0.000000e+00> : vector<16x10xf32>
    %23 = tpu.matmul %21, %22, %cst_20 {dimension_numbers = #tpu.dot_dimension_numbers<[1], [0], [0], [1], [0, 0, 1, 1], [], []>} : vector<16x128xf32>, vector<128x10xf32>, vector<16x10xf32> -> vector<16x10xf32>
    %c0_21 = arith.constant 0 : index
    %c0_22 = arith.constant 0 : index
    %24 = vector.load %arg10[%c0_21, %c0_22] : memref<1x10xf32, #tpu.memory_space<vmem>>, vector<1x10xf32>
    %25 = vector.broadcast %24 : vector<1x10xf32> to vector<16x10xf32>
    %26 = arith.addf %23, %25 : vector<16x10xf32>
    %cst_23 = arith.constant dense<0xFF800000> : vector<16xf32>
    %27 = vector.multi_reduction <maximumf>, %26, %cst_23 [1] : vector<16x10xf32> to vector<16xf32>
    %28 = vector.shape_cast %27 : vector<16xf32> to vector<16x1xf32>
    %29 = vector.broadcast %28 : vector<16x1xf32> to vector<16x10xf32>
    %30 = arith.subf %26, %29 : vector<16x10xf32>
    %31 = math.exp %30 : vector<16x10xf32>
    %cst_24 = arith.constant dense<0.000000e+00> : vector<16xf32>
    %32 = vector.multi_reduction <add>, %31, %cst_24 [1] : vector<16x10xf32> to vector<16xf32>
    %33 = vector.shape_cast %32 : vector<16xf32> to vector<16x1xf32>
    %34 = math.log %33 : vector<16x1xf32>
    %35 = arith.addf %28, %34 : vector<16x1xf32>
    %36 = vector.broadcast %35 : vector<16x1xf32> to vector<16x10xf32>
    %37 = arith.subf %26, %36 : vector<16x10xf32>
    %38 = vector.extract_strided_slice %37 {offsets = [0, 0], sizes = [8, 10], strides = [1, 1]} : vector<16x10xf32> to vector<8x10xf32>
    %39 = vector.extract_strided_slice %37 {offsets = [8, 0], sizes = [8, 10], strides = [1, 1]} : vector<16x10xf32> to vector<8x10xf32>
    %c0_25 = arith.constant 0 : index
    %c0_26 = arith.constant 0 : index
    %40 = vector.load %arg11[%c0_25, %c0_26] : memref<10x128xf32, #tpu.memory_space<vmem>>, vector<10x128xf32>
    %cst_27 = arith.constant dense<0.000000e+00> : vector<8x128xf32>
    %41 = tpu.matmul %38, %40, %cst_27 {dimension_numbers = #tpu.dot_dimension_numbers<[1], [0], [0], [1], [0, 0, 1, 1], [], []>} : vector<8x10xf32>, vector<10x128xf32>, vector<8x128xf32> -> vector<8x128xf32>
    %c0_28 = arith.constant 0 : index
    %c0_29 = arith.constant 0 : index
    %42 = vector.load %arg12[%c0_28, %c0_29] : memref<10x128xf32, #tpu.memory_space<vmem>>, vector<10x128xf32>
    %cst_30 = arith.constant dense<0.000000e+00> : vector<8x128xf32>
    %43 = tpu.matmul %39, %42, %cst_30 {dimension_numbers = #tpu.dot_dimension_numbers<[1], [0], [0], [1], [0, 0, 1, 1], [], []>} : vector<8x10xf32>, vector<10x128xf32>, vector<8x128xf32> -> vector<8x128xf32>
    %44 = arith.addf %41, %43 : vector<8x128xf32>
    %c0_31 = arith.constant 0 : index
    %c0_32 = arith.constant 0 : index
    %45 = vector.load %arg13[%c0_31, %c0_32] : memref<1x128xf32, #tpu.memory_space<vmem>>, vector<1x128xf32>
    %46 = vector.broadcast %45 : vector<1x128xf32> to vector<8x128xf32>
    %47 = arith.addf %44, %46 : vector<8x128xf32>
    %cst_33 = arith.constant 0.000000e+00 : f32
    %48 = vector.broadcast %cst_33 : f32 to vector<8x128xf32>
    %49 = arith.maximumf %47, %48 : vector<8x128xf32>
    %c0_34 = arith.constant 0 : index
    %c0_35 = arith.constant 0 : index
    %50 = vector.load %arg14[%c0_34, %c0_35] : memref<128x128xf32, #tpu.memory_space<vmem>>, vector<128x128xf32>
    %cst_36 = arith.constant dense<0.000000e+00> : vector<8x128xf32>
    %51 = tpu.matmul %49, %50, %cst_36 {dimension_numbers = #tpu.dot_dimension_numbers<[1], [0], [0], [1], [0, 0, 1, 1], [], []>} : vector<8x128xf32>, vector<128x128xf32>, vector<8x128xf32> -> vector<8x128xf32>
    %c0_37 = arith.constant 0 : index
    %c0_38 = arith.constant 0 : index
    %52 = vector.load %arg15[%c0_37, %c0_38] : memref<1x128xf32, #tpu.memory_space<vmem>>, vector<1x128xf32>
    %53 = vector.broadcast %52 : vector<1x128xf32> to vector<8x128xf32>
    %54 = arith.addf %51, %53 : vector<8x128xf32>
    %cst_39 = arith.constant 0.000000e+00 : f32
    %55 = vector.broadcast %cst_39 : f32 to vector<8x128xf32>
    %56 = arith.maximumf %54, %55 : vector<8x128xf32>
    %c0_40 = arith.constant 0 : index
    %c0_41 = arith.constant 0 : index
    %57 = vector.load %arg16[%c0_40, %c0_41] : memref<128x1xf32, #tpu.memory_space<vmem>>, vector<128x1xf32>
    %cst_42 = arith.constant dense<0.000000e+00> : vector<8x1xf32>
    %58 = tpu.matmul %56, %57, %cst_42 {dimension_numbers = #tpu.dot_dimension_numbers<[1], [0], [0], [1], [0, 0, 1, 1], [], []>} : vector<8x128xf32>, vector<128x1xf32>, vector<8x1xf32> -> vector<8x1xf32>
    %c0_43 = arith.constant 0 : index
    %c0_44 = arith.constant 0 : index
    %59 = vector.load %arg17[%c0_43, %c0_44] : memref<1x1xf32, #tpu.memory_space<vmem>>, vector<1x1xf32>
    %60 = vector.broadcast %59 : vector<1x1xf32> to vector<8x1xf32>
    %61 = arith.addf %58, %60 : vector<8x1xf32>
    %62 = arith.negf %61 : vector<8x1xf32>
    %63 = math.exp %62 : vector<8x1xf32>
    %cst_45 = arith.constant 1.000000e+00 : f32
    %64 = vector.broadcast %cst_45 : f32 to vector<8x1xf32>
    %65 = arith.addf %64, %63 : vector<8x1xf32>
    %66 = arith.divf %64, %65 : vector<8x1xf32>
    %c0_46 = arith.constant 0 : index
    %c0_47 = arith.constant 0 : index
    %67 = vector.load %arg18[%c0_46, %c0_47] : memref<8x1xf32, #tpu.memory_space<vmem>>, vector<8x1xf32>
    tpu.vector_store %arg18[%c0_46, %c0_47], %66 {strides = array<i32>} : memref<8x1xf32, #tpu.memory_space<vmem>>, vector<8x1xf32>,
    return
  }
  func.func @transform_0(%arg0: i32) -> (i32, i32) {
    %c0_i32 = arith.constant 0 : i32
    %c0_i32_0 = arith.constant 0 : i32
    return %arg0, %c0_i32 : i32, i32
  }
  func.func @transform_1(%arg0: i32) -> (i32, i32) {
    %c0_i32 = arith.constant 0 : i32
    %c0_i32_0 = arith.constant 0 : i32
    return %arg0, %c0_i32 : i32, i32
  }
  func.func @transform_2(%arg0: i32) -> (i32, i32) {
    %c0_i32 = arith.constant 0 : i32
    %c0_i32_0 = arith.constant 0 : i32
    %c0_i32_1 = arith.constant 0 : i32
    return %c0_i32, %c0_i32_0 : i32, i32
  }
  func.func @transform_3(%arg0: i32) -> (i32, i32) {
    %c0_i32 = arith.constant 0 : i32
    %c0_i32_0 = arith.constant 0 : i32
    %c0_i32_1 = arith.constant 0 : i32
    return %c0_i32, %c0_i32_0 : i32, i32
  }
  func.func @transform_4(%arg0: i32) -> (i32, i32) {
    %c0_i32 = arith.constant 0 : i32
    %c0_i32_0 = arith.constant 0 : i32
    %c0_i32_1 = arith.constant 0 : i32
    return %c0_i32, %c0_i32_0 : i32, i32
  }
  func.func @transform_5(%arg0: i32) -> (i32, i32) {
    %c0_i32 = arith.constant 0 : i32
    %c0_i32_0 = arith.constant 0 : i32
    %c0_i32_1 = arith.constant 0 : i32
    return %c0_i32, %c0_i32_0 : i32, i32
  }
  func.func @transform_6(%arg0: i32) -> (i32, i32) {
    %c0_i32 = arith.constant 0 : i32
    %c0_i32_0 = arith.constant 0 : i32
    %c0_i32_1 = arith.constant 0 : i32
    return %c0_i32, %c0_i32_0 : i32, i32
  }
  func.func @transform_7(%arg0: i32) -> (i32, i32) {
    %c0_i32 = arith.constant 0 : i32
    %c0_i32_0 = arith.constant 0 : i32
    %c0_i32_1 = arith.constant 0 : i32
    return %c0_i32, %c0_i32_0 : i32, i32
  }
  func.func @transform_8(%arg0: i32) -> (i32, i32) {
    %c0_i32 = arith.constant 0 : i32
    %c0_i32_0 = arith.constant 0 : i32
    %c0_i32_1 = arith.constant 0 : i32
    return %c0_i32, %c0_i32_0 : i32, i32
  }
  func.func @transform_9(%arg0: i32) -> (i32, i32) {
    %c0_i32 = arith.constant 0 : i32
    %c0_i32_0 = arith.constant 0 : i32
    %c0_i32_1 = arith.constant 0 : i32
    return %c0_i32, %c0_i32_0 : i32, i32
  }
  func.func @transform_10(%arg0: i32) -> (i32, i32) {
    %c0_i32 = arith.constant 0 : i32
    %c0_i32_0 = arith.constant 0 : i32
    %c0_i32_1 = arith.constant 0 : i32
    return %c0_i32, %c0_i32_0 : i32, i32
  }
  func.func @transform_11(%arg0: i32) -> (i32, i32) {
    %c0_i32 = arith.constant 0 : i32
    %c0_i32_0 = arith.constant 0 : i32
    %c0_i32_1 = arith.constant 0 : i32
    return %c0_i32, %c0_i32_0 : i32, i32
  }
  func.func @transform_12(%arg0: i32) -> (i32, i32) {
    %c0_i32 = arith.constant 0 : i32
    %c0_i32_0 = arith.constant 0 : i32
    %c0_i32_1 = arith.constant 0 : i32
    return %c0_i32, %c0_i32_0 : i32, i32
  }
  func.func @transform_13(%arg0: i32) -> (i32, i32) {
    %c0_i32 = arith.constant 0 : i32
    %c0_i32_0 = arith.constant 0 : i32
    %c0_i32_1 = arith.constant 0 : i32
    return %c0_i32, %c0_i32_0 : i32, i32
  }
  func.func @transform_14(%arg0: i32) -> (i32, i32) {
    %c0_i32 = arith.constant 0 : i32
    %c0_i32_0 = arith.constant 0 : i32
    %c0_i32_1 = arith.constant 0 : i32
    return %c0_i32, %c0_i32_0 : i32, i32
  }
  func.func @transform_15(%arg0: i32) -> (i32, i32) {
    %c0_i32 = arith.constant 0 : i32
    %c0_i32_0 = arith.constant 0 : i32
    %c0_i32_1 = arith.constant 0 : i32
    return %c0_i32, %c0_i32_0 : i32, i32
  }
  func.func @transform_16(%arg0: i32) -> (i32, i32) {
    %c0_i32 = arith.constant 0 : i32
    %c0_i32_0 = arith.constant 0 : i32
    %c0_i32_1 = arith.constant 0 : i32
    return %c0_i32, %c0_i32_0 : i32, i32
  }
  func.func @transform_17(%arg0: i32) -> (i32, i32) {
    %c0_i32 = arith.constant 0 : i32
    %c0_i32_0 = arith.constant 0 : i32
    return %arg0, %c0_i32 : i32, i32
  }
}

</mosaic_0001>

<bundles_post_ra>
// kernel: forward.1
= control target key start
LH: loop header
LB: loop body
LE: loop exit
PB: predicated region body
PF: predicated region fallthrough
CT: control target
= control target key end

     0   :  { %vm1336_vm0 = vcmask 523264   ;;  %vm1732_vm1 = vcmask 80896   ;;  %vm1766_vm2 = vcmask 1041408   ;;  %vm1922_vm6 = vcmask 7168   ;;  %s4377_s2 = inlined_call_operand.vmem [shape: f32[256,1600], index: 2, kind: input, shape index: {}]   ;;  %s4378_s0 = inlined_call_operand.vmem [shape: f32[8,256], index: 0, kind: input, shape index: {}]   ;;  %s4379_s1 = inlined_call_operand.vmem [shape: f32[8,256], index: 1, kind: input, shape index: {}]   ;;  %s4380_s4 = inlined_call_operand.vmem [shape: f32[1600,128], index: 4, kind: input, shape index: {}]   ;;  %s4381_s3 = inlined_call_operand.vmem [shape: f32[1,1600], index: 3, kind: input, shape index: {}]   ;;  %s4382_s5 = inlined_call_operand.vmem [shape: f32[1,128], index: 5, kind: input, shape index: {}]   ;;  %s4383_s7 = inlined_call_operand.vmem [shape: f32[1,128], index: 7, kind: input, shape index: {}]   ;;  %s4384_s6 = inlined_call_operand.vmem [shape: f32[128,128], index: 6, kind: input, shape index: {}]   ;;  %s4385_s8 = inlined_call_operand.vmem [shape: f32[128,10], index: 8, kind: input, shape index: {}]   ;;  %s4386_s9 = inlined_call_operand.vmem [shape: f32[1,10], index: 9, kind: input, shape index: {}]   ;;  %s4387_s11 = inlined_call_operand.vmem [shape: f32[10,128], index: 11, kind: input, shape index: {}]   ;;  %s4388_s10 = inlined_call_operand.vmem [shape: f32[10,128], index: 10, kind: input, shape index: {}]   ;;  %s4389_s13 = inlined_call_operand.vmem [shape: f32[128,128], index: 13, kind: input, shape index: {}]   ;;  %s4390_s12 = inlined_call_operand.vmem [shape: f32[1,128], index: 12, kind: input, shape index: {}]   ;;  %s4391_s14 = inlined_call_operand.vmem [shape: f32[1,128], index: 14, kind: input, shape index: {}]   ;;  %s4392_s15 = inlined_call_operand.vmem [shape: f32[128,1], index: 15, kind: input, shape index: {}]   ;;  %s4393_s16 = inlined_call_operand.<no memory space> [shape: f32[1,1], index: 16, kind: input, shape index: {}]   ;;  %s4394_s17 = inlined_call_operand.vmem [shape: f32[8,1], index: 17, kind: output, shape index: {}]  }
   0x1   :  { %4397 = sst [smem:[#allocation3_spill]] %s4377_s2 }
   0x2   :  { %4398 = sst [smem:[#allocation4_spill]] %s4378_s0 }
   0x3   :  { %s4399_s26 = sld [smem:[#allocation3_spill]] }
   0x4   :  { %s4400_s27 = sld [smem:[#allocation4_spill]] }
   0x9   :  { %v257_v0 = vld [vmem:[%s4399_s26 + $0x618] sm:$0xff]  ;;  %v258_v1 = vld [vmem:[%s4399_s26 + $0x620] sm:$0xff]  ;;  %v244_v2 = vld [vmem:[%s4399_s26 + $0x5b0] sm:$0xff] }
   0xa   :  { %508 = vmatpush.msra.mxu0 %v257_v0  ;;  %554 = vmatpush.msra.mxu2 %v258_v1  ;;  %v465_v3 = vld [vmem:[%s4399_s26 + $0xc98] sm:$0xff]  ;;  %v466_v5 = vld [vmem:[%s4399_s26 + $0xca0] sm:$0xff]  ;;  %v231_v6 = vld [vmem:[%s4399_s26 + $0x548] sm:$0xff] }
   0xb   :  { %v245_v4 = vld [vmem:[%s4399_s26 + $0x5b8] sm:$0xff]  ;;  %531 = vmatpush.msra.mxu1 %v465_v3  ;;  %577 = vmatpush.msra.mxu3 %v466_v5  ;;  %v452_v7 = vld [vmem:[%s4399_s26 + $0xc30] sm:$0xff]  ;;  %v439_v10 = vld [vmem:[%s4399_s26 + $0xbc8] sm:$0xff] }
   0xc   :  { %v232_v8 = vld [vmem:[%s4399_s26 + $0x550] sm:$0xff]  ;;  %509 = vmatpush.msra.mxu0 %v244_v2  ;;  %555 = vmatpush.msra.mxu2 %v245_v4  ;;  %v453_v9 = vld [vmem:[%s4399_s26 + $0xc38] sm:$0xff]  ;;  %v218_v11 = vld [vmem:[%s4399_s26 + $0x4e0] sm:$0xff] }
   0xd   :  { %532 = vmatpush.msra.mxu1 %v452_v7  ;;  %578 = vmatpush.msra.mxu3 %v453_v9  ;;  %v219_v12 = vld [vmem:[%s4399_s26 + $0x4e8] sm:$0xff]  ;;  %v440_v13 = vld [vmem:[%s4399_s26 + $0xbd0] sm:$0xff]  ;;  %v426_v14 = vld [vmem:[%s4399_s26 + $0xb60] sm:$0xff] }
   0xe   :  { %510 = vmatpush.msra.mxu0 %v231_v6  ;;  %556 = vmatpush.msra.mxu2 %v232_v8  ;;  %v427_v15 = vld [vmem:[%s4399_s26 + $0xb68] sm:$0xff]  ;;  %v205_v16 = vld [vmem:[%s4399_s26 + $0x478] sm:$0xff]  ;;  %v206_v17 = vld [vmem:[%s4399_s26 + $0x480] sm:$0xff] }
   0xf   :  { %533 = vmatpush.msra.mxu1 %v439_v10  ;;  %579 = vmatpush.msra.mxu3 %v440_v13  ;;  %v413_v18 = vld [vmem:[%s4399_s26 + $0xaf8] sm:$0xff]  ;;  %v414_v19 = vld [vmem:[%s4399_s26 + $0xb00] sm:$0xff]  ;;  %v192_v20 = vld [vmem:[%s4399_s26 + $0x410] sm:$0xff] }
  0x10   :  { %511 = vmatpush.msra.mxu0 %v218_v11  ;;  %557 = vmatpush.msra.mxu2 %v219_v12  ;;  %v193_v21 = vld [vmem:[%s4399_s26 + $0x418] sm:$0xff]  ;;  %v400_v22 = vld [vmem:[%s4399_s26 + $0xa90] sm:$0xff]  ;;  %v179_v24 = vld [vmem:[%s4399_s26 + $0x3a8] sm:$0xff] }
  0x11   :  { %534 = vmatpush.msra.mxu1 %v426_v14  ;;  %580 = vmatpush.msra.mxu3 %v427_v15  ;;  %v401_v23 = vld [vmem:[%s4399_s26 + $0xa98] sm:$0xff]  ;;  %v180_v25 = vld [vmem:[%s4399_s26 + $0x3b0] sm:$0xff]  ;;  %v387_v26 = vld [vmem:[%s4399_s26 + $0xa28] sm:$0xff] }
  0x12   :  { %512 = vmatpush.msra.mxu0 %v205_v16  ;;  %558 = vmatpush.msra.mxu2 %v206_v17  ;;  %v388_v27 = vld [vmem:[%s4399_s26 + $0xa30] sm:$0xff]  ;;  %v166_v28 = vld [vmem:[%s4399_s26 + $0x340] sm:$0xff]  ;;  %v167_v29 = vld [vmem:[%s4399_s26 + $0x348] sm:$0xff] }
  0x13   :  { %535 = vmatpush.msra.mxu1 %v413_v18  ;;  %581 = vmatpush.msra.mxu3 %v414_v19  ;;  %v374_v30 = vld [vmem:[%s4399_s26 + $0x9c0] sm:$0xff]  ;;  %v375_v31 = vld [vmem:[%s4399_s26 + $0x9c8] sm:$0xff]  ;;  %v153_v32 = vld [vmem:[%s4399_s26 + $0x2d8] sm:$0xff] }
  0x14   :  { %513 = vmatpush.msra.mxu0 %v192_v20  ;;  %559 = vmatpush.msra.mxu2 %v193_v21  ;;  %v154_v33 = vld [vmem:[%s4399_s26 + $0x2e0] sm:$0xff]  ;;  %v361_v34 = vld [vmem:[%s4399_s26 + $0x958] sm:$0xff]  ;;  %v140_v36 = vld [vmem:[%s4399_s26 + $0x270] sm:$0xff] }
  0x15   :  { %536 = vmatpush.msra.mxu1 %v400_v22  ;;  %582 = vmatpush.msra.mxu3 %v401_v23  ;;  %v362_v35 = vld [vmem:[%s4399_s26 + $0x960] sm:$0xff]  ;;  %v141_v37 = vld [vmem:[%s4399_s26 + $0x278] sm:$0xff]  ;;  %v348_v38 = vld [vmem:[%s4399_s26 + $0x8f0] sm:$0xff] }
  0x16   :  { %514 = vmatpush.msra.mxu0 %v179_v24  ;;  %560 = vmatpush.msra.mxu2 %v180_v25  ;;  %v349_v39 = vld [vmem:[%s4399_s26 + $0x8f8] sm:$0xff]  ;;  %v127_v40 = vld [vmem:[%s4399_s26 + $0x208] sm:$0xff]  ;;  %v128_v41 = vld [vmem:[%s4399_s26 + $0x210] sm:$0xff] }
  0x17   :  { %537 = vmatpush.msra.mxu1 %v387_v26  ;;  %583 = vmatpush.msra.mxu3 %v388_v27  ;;  %v335_v42 = vld [vmem:[%s4399_s26 + $0x888] sm:$0xff]  ;;  %v336_v43 = vld [vmem:[%s4399_s26 + $0x890] sm:$0xff]  ;;  %v114_v44 = vld [vmem:[%s4399_s26 + $0x1a0] sm:$0xff] }
  0x18   :  { %515 = vmatpush.msra.mxu0 %v166_v28  ;;  %561 = vmatpush.msra.mxu2 %v167_v29  ;;  %v115_v45 = vld [vmem:[%s4399_s26 + $0x1a8] sm:$0xff]  ;;  %v322_v46 = vld [vmem:[%s4399_s26 + $0x820] sm:$0xff]  ;;  %v101_v48 = vld [vmem:[%s4399_s26 + $0x138] sm:$0xff] }
  0x19   :  { %538 = vmatpush.msra.mxu1 %v374_v30  ;;  %584 = vmatpush.msra.mxu3 %v375_v31  ;;  %v323_v47 = vld [vmem:[%s4399_s26 + $0x828] sm:$0xff]  ;;  %v102_v49 = vld [vmem:[%s4399_s26 + $0x140] sm:$0xff]  ;;  %v309_v50 = vld [vmem:[%s4399_s26 + $0x7b8] sm:$0xff] }
  0x1a   :  { %516 = vmatpush.msra.mxu0 %v153_v32  ;;  %562 = vmatpush.msra.mxu2 %v154_v33  ;;  %v310_v51 = vld [vmem:[%s4399_s26 + $0x7c0] sm:$0xff]  ;;  %v88_v52 = vld [vmem:[%s4399_s26 + $0xd0] sm:$0xff]  ;;  %v89_v53 = vld [vmem:[%s4399_s26 + $0xd8] sm:$0xff] }
  0x1b   :  { %539 = vmatpush.msra.mxu1 %v361_v34  ;;  %585 = vmatpush.msra.mxu3 %v362_v35  ;;  %v296_v54 = vld [vmem:[%s4399_s26 + $0x750] sm:$0xff]  ;;  %v297_v55 = vld [vmem:[%s4399_s26 + $0x758] sm:$0xff]  ;;  %v75_v56 = vld [vmem:[%s4399_s26 + $0x68] sm:$0xff] }
  0x1c   :  { %517 = vmatpush.msra.mxu0 %v140_v36  ;;  %563 = vmatpush.msra.mxu2 %v141_v37  ;;  %v76_v57 = vld [vmem:[%s4399_s26 + $0x70] sm:$0xff]  ;;  %v283_v58 = vld [vmem:[%s4399_s26 + $0x6e8] sm:$0xff]  ;;  %v62_v60 = vld [vmem:[%s4399_s26] sm:$0xff] }
  0x1d   :  { %540 = vmatpush.msra.mxu1 %v348_v38  ;;  %586 = vmatpush.msra.mxu3 %v349_v39  ;;  %v284_v59 = vld [vmem:[%s4399_s26 + $0x6f0] sm:$0xff]  ;;  %v63_v61 = vld [vmem:[%s4399_s26 + $0x8] sm:$0xff]  ;;  %v270_v0 = vld [vmem:[%s4399_s26 + $0x680] sm:$0xff] }
  0x1e   :  { %518 = vmatpush.msra.mxu0 %v127_v40  ;;  %564 = vmatpush.msra.mxu2 %v128_v41  ;;  %v259_v62 = vld [vmem:[%s4399_s26 + $0x628] sm:$0xff]  ;;  %v260_v63 = vld [vmem:[%s4399_s26 + $0x630] sm:$0xff]  ;;  %v246_v2 = vld [vmem:[%s4399_s26 + $0x5c0] sm:$0xff] }
  0x1f   :  { %541 = vmatpush.msra.mxu1 %v335_v42  ;;  %587 = vmatpush.msra.mxu3 %v336_v43  ;;  %v271_v1 = vld [vmem:[%s4399_s26 + $0x688] sm:$0xff]  ;;  %v468_v5 = vld [vmem:[%s4399_s26 + $0xcb0] sm:$0xff]  ;;  %v233_v6 = vld [vmem:[%s4399_s26 + $0x558] sm:$0xff] }
  0x20   :  { %519 = vmatpush.msra.mxu0 %v114_v44  ;;  %565 = vmatpush.msra.mxu2 %v115_v45  ;;  %v467_v3 = vld [vmem:[%s4399_s26 + $0xca8] sm:$0xff]  ;;  %v454_v7 = vld [vmem:[%s4399_s26 + $0xc40] sm:$0xff]  ;;  %v220_v10 = vld [vmem:[%s4399_s26 + $0x4f0] sm:$0xff] }
  0x21   :  { %542 = vmatpush.msra.mxu1 %v322_v46  ;;  %588 = vmatpush.msra.mxu3 %v323_v47  ;;  %v247_v4 = vld [vmem:[%s4399_s26 + $0x5c8] sm:$0xff]  ;;  %v234_v8 = vld [vmem:[%s4399_s26 + $0x560] sm:$0xff]  ;;  %v441_v11 = vld [vmem:[%s4399_s26 + $0xbd8] sm:$0xff] }
  0x22   :  { %520 = vmatpush.msra.mxu0 %v101_v48  ;;  %566 = vmatpush.msra.mxu2 %v102_v49  ;;  %v455_v9 = vld [vmem:[%s4399_s26 + $0xc48] sm:$0xff]  ;;  %v221_v12 = vld [vmem:[%s4399_s26 + $0x4f8] sm:$0xff]  ;;  %v442_v13 = vld [vmem:[%s4399_s26 + $0xbe0] sm:$0xff] }
  0x23   :  { %543 = vmatpush.msra.mxu1 %v309_v50  ;;  %589 = vmatpush.msra.mxu3 %v310_v51  ;;  %v207_v14 = vld [vmem:[%s4399_s26 + $0x488] sm:$0xff]  ;;  %v428_v15 = vld [vmem:[%s4399_s26 + $0xb70] sm:$0xff]  ;;  %v429_v17 = vld [vmem:[%s4399_s26 + $0xb78] sm:$0xff] }
  0x24   :  { %521 = vmatpush.msra.mxu0 %v88_v52  ;;  %567 = vmatpush.msra.mxu2 %v89_v53  ;;  %v208_v16 = vld [vmem:[%s4399_s26 + $0x490] sm:$0xff]  ;;  %v194_v18 = vld [vmem:[%s4399_s26 + $0x420] sm:$0xff]  ;;  %v415_v19 = vld [vmem:[%s4399_s26 + $0xb08] sm:$0xff] }
  0x25   :  { %544 = vmatpush.msra.mxu1 %v296_v54  ;;  %590 = vmatpush.msra.mxu3 %v297_v55  ;;  %v195_v20 = vld [vmem:[%s4399_s26 + $0x428] sm:$0xff]  ;;  %v416_v21 = vld [vmem:[%s4399_s26 + $0xb10] sm:$0xff]  ;;  %v181_v22 = vld [vmem:[%s4399_s26 + $0x3b8] sm:$0xff] }
  0x26   :  { %522 = vmatpush.msra.mxu0 %v75_v56  ;;  %568 = vmatpush.msra.mxu2 %v76_v57  ;;  %v402_v23 = vld [vmem:[%s4399_s26 + $0xaa0] sm:$0xff]  ;;  %v403_v25 = vld [vmem:[%s4399_s26 + $0xaa8] sm:$0xff]  ;;  %v168_v26 = vld [vmem:[%s4399_s26 + $0x350] sm:$0xff] }
  0x27   :  { %545 = vmatpush.msra.mxu1 %v283_v58  ;;  %591 = vmatpush.msra.mxu3 %v284_v59  ;;  %v182_v24 = vld [vmem:[%s4399_s26 + $0x3c0] sm:$0xff]  ;;  %v389_v27 = vld [vmem:[%s4399_s26 + $0xa38] sm:$0xff]  ;;  %v155_v30 = vld [vmem:[%s4399_s26 + $0x2e8] sm:$0xff] }
  0x28   :  { %523 = vmatpush.msra.mxu0 %v62_v60  ;;  %569 = vmatpush.msra.mxu2 %v63_v61  ;;  %v169_v28 = vld [vmem:[%s4399_s26 + $0x358] sm:$0xff]  ;;  %v390_v29 = vld [vmem:[%s4399_s26 + $0xa40] sm:$0xff]  ;;  %v376_v31 = vld [vmem:[%s4399_s26 + $0x9d0] sm:$0xff] }
  0x29   :  { %546 = vmatpush.msra.mxu1 %v270_v0  ;;  %592 = vmatpush.msra.mxu3 %v271_v1  ;;  %v156_v32 = vld [vmem:[%s4399_s26 + $0x2f0] sm:$0xff]  ;;  %v377_v33 = vld [vmem:[%s4399_s26 + $0x9d8] sm:$0xff]  ;;  %v142_v34 = vld [vmem:[%s4399_s26 + $0x280] sm:$0xff] }
  0x2a   :  { %600 = vmatpush.msrb.mxu0 %v259_v62  ;;  %646 = vmatpush.msrb.mxu2 %v260_v63  ;;  %v363_v35 = vld [vmem:[%s4399_s26 + $0x968] sm:$0xff]  ;;  %v364_v37 = vld [vmem:[%s4399_s26 + $0x970] sm:$0xff]  ;;  %v129_v38 = vld [vmem:[%s4399_s26 + $0x218] sm:$0xff] }
  0x2b   :  { %623 = vmatpush.msrb.mxu1 %v467_v3  ;;  %669 = vmatpush.msrb.mxu3 %v468_v5  ;;  %v143_v36 = vld [vmem:[%s4399_s26 + $0x288] sm:$0xff]  ;;  %v350_v39 = vld [vmem:[%s4399_s26 + $0x900] sm:$0xff]  ;;  %v116_v42 = vld [vmem:[%s4399_s26 + $0x1b0] sm:$0xff] }
  0x2c   :  { %601 = vmatpush.msrb.mxu0 %v246_v2  ;;  %647 = vmatpush.msrb.mxu2 %v247_v4  ;;  %v130_v40 = vld [vmem:[%s4399_s26 + $0x220] sm:$0xff]  ;;  %v351_v41 = vld [vmem:[%s4399_s26 + $0x908] sm:$0xff]  ;;  %v337_v43 = vld [vmem:[%s4399_s26 + $0x898] sm:$0xff] }
  0x2d   :  { %624 = vmatpush.msrb.mxu1 %v454_v7  ;;  %670 = vmatpush.msrb.mxu3 %v455_v9  ;;  %v117_v44 = vld [vmem:[%s4399_s26 + $0x1b8] sm:$0xff]  ;;  %v338_v45 = vld [vmem:[%s4399_s26 + $0x8a0] sm:$0xff]  ;;  %v103_v46 = vld [vmem:[%s4399_s26 + $0x148] sm:$0xff] }
  0x2e   :  { %602 = vmatpush.msrb.mxu0 %v233_v6  ;;  %648 = vmatpush.msrb.mxu2 %v234_v8  ;;  %v324_v47 = vld [vmem:[%s4399_s26 + $0x830] sm:$0xff]  ;;  %v325_v49 = vld [vmem:[%s4399_s26 + $0x838] sm:$0xff]  ;;  %v90_v50 = vld [vmem:[%s4399_s26 + $0xe0] sm:$0xff] }
  0x2f   :  { %625 = vmatpush.msrb.mxu1 %v441_v11  ;;  %671 = vmatpush.msrb.mxu3 %v442_v13  ;;  %v104_v48 = vld [vmem:[%s4399_s26 + $0x150] sm:$0xff]  ;;  %v311_v51 = vld [vmem:[%s4399_s26 + $0x7c8] sm:$0xff]  ;;  %v77_v54 = vld [vmem:[%s4399_s26 + $0x78] sm:$0xff] }
  0x30   :  { %603 = vmatpush.msrb.mxu0 %v220_v10  ;;  %649 = vmatpush.msrb.mxu2 %v221_v12  ;;  %v91_v52 = vld [vmem:[%s4399_s26 + $0xe8] sm:$0xff]  ;;  %v312_v53 = vld [vmem:[%s4399_s26 + $0x7d0] sm:$0xff]  ;;  %v298_v55 = vld [vmem:[%s4399_s26 + $0x760] sm:$0xff] }
  0x31   :  { %626 = vmatpush.msrb.mxu1 %v428_v15  ;;  %672 = vmatpush.msrb.mxu3 %v429_v17  ;;  %v78_v56 = vld [vmem:[%s4399_s26 + $0x80] sm:$0xff]  ;;  %v299_v57 = vld [vmem:[%s4399_s26 + $0x768] sm:$0xff]  ;;  %v64_v58 = vld [vmem:[%s4399_s26 + $0x10] sm:$0xff] }
  0x32   :  { %604 = vmatpush.msrb.mxu0 %v207_v14  ;;  %650 = vmatpush.msrb.mxu2 %v208_v16  ;;  %v285_v59 = vld [vmem:[%s4399_s26 + $0x6f8] sm:$0xff]  ;;  %v286_v61 = vld [vmem:[%s4399_s26 + $0x700] sm:$0xff]  ;;  %v272_v1 = vld [vmem:[%s4399_s26 + $0x690] sm:$0xff] }
  0x33   :  { %627 = vmatpush.msrb.mxu1 %v415_v19  ;;  %673 = vmatpush.msrb.mxu3 %v416_v21  ;;  %v65_v60 = vld [vmem:[%s4399_s26 + $0x18] sm:$0xff]  ;;  %v2484_v62 = vld [vmem:[%s4400_s27] sm:$0xff]  ;;  %v2503_v3 = vld [vmem:[%s4400_s27 + $0x8] sm:$0xff] }
  0x34   :  { %605 = vmatpush.msrb.mxu0 %v194_v18  ;;  %651 = vmatpush.msrb.mxu2 %v195_v20  ;;  %v261_v63 = vld [vmem:[%s4399_s26 + $0x638] sm:$0xff]  ;;  %v262_v0 = vld [vmem:[%s4399_s26 + $0x640] sm:$0xff]  ;;  %v248_v4 = vld [vmem:[%s4399_s26 + $0x5d0] sm:$0xff] }
  0x35   :  { %628 = vmatpush.msrb.mxu1 %v402_v23  ;;  %674 = vmatpush.msrb.mxu3 %v403_v25  ;;  %v273_v2 = vld [vmem:[%s4399_s26 + $0x698] sm:$0xff]  ;;  %v470_v7 = vld [vmem:[%s4399_s26 + $0xcc0] sm:$0xff]  ;;  %v235_v8 = vld [vmem:[%s4399_s26 + $0x568] sm:$0xff] }
  0x36   :  { %606 = vmatpush.msrb.mxu0 %v181_v22  ;;  %652 = vmatpush.msrb.mxu2 %v182_v24  ;;  %v469_v5 = vld [vmem:[%s4399_s26 + $0xcb8] sm:$0xff]  ;;  %v456_v9 = vld [vmem:[%s4399_s26 + $0xc50] sm:$0xff]  ;;  %v222_v12 = vld [vmem:[%s4399_s26 + $0x500] sm:$0xff] }
  0x37   :  { %629 = vmatpush.msrb.mxu1 %v389_v27  ;;  %675 = vmatpush.msrb.mxu3 %v390_v29  ;;  %v249_v6 = vld [vmem:[%s4399_s26 + $0x5d8] sm:$0xff]  ;;  %v236_v10 = vld [vmem:[%s4399_s26 + $0x570] sm:$0xff]  ;;  %v443_v13 = vld [vmem:[%s4399_s26 + $0xbe8] sm:$0xff] }
  0x38   :  { %607 = vmatpush.msrb.mxu0 %v168_v26  ;;  %653 = vmatpush.msrb.mxu2 %v169_v28  ;;  %v457_v11 = vld [vmem:[%s4399_s26 + $0xc58] sm:$0xff]  ;;  %v223_v14 = vld [vmem:[%s4399_s26 + $0x508] sm:$0xff]  ;;  %v444_v15 = vld [vmem:[%s4399_s26 + $0xbf0] sm:$0xff] }
  0x39   :  { %630 = vmatpush.msrb.mxu1 %v376_v31  ;;  %676 = vmatpush.msrb.mxu3 %v377_v33  ;;  %v209_v16 = vld [vmem:[%s4399_s26 + $0x498] sm:$0xff]  ;;  %v430_v17 = vld [vmem:[%s4399_s26 + $0xb80] sm:$0xff]  ;;  %v431_v19 = vld [vmem:[%s4399_s26 + $0xb88] sm:$0xff] }
  0x3a   :  { %608 = vmatpush.msrb.mxu0 %v155_v30  ;;  %654 = vmatpush.msrb.mxu2 %v156_v32  ;;  %v210_v18 = vld [vmem:[%s4399_s26 + $0x4a0] sm:$0xff]  ;;  %v196_v20 = vld [vmem:[%s4399_s26 + $0x430] sm:$0xff]  ;;  %v417_v21 = vld [vmem:[%s4399_s26 + $0xb18] sm:$0xff] }
  0x3b   :  { %631 = vmatpush.msrb.mxu1 %v363_v35  ;;  %677 = vmatpush.msrb.mxu3 %v364_v37  ;;  %v197_v22 = vld [vmem:[%s4399_s26 + $0x438] sm:$0xff]  ;;  %v418_v23 = vld [vmem:[%s4399_s26 + $0xb20] sm:$0xff]  ;;  %v183_v24 = vld [vmem:[%s4399_s26 + $0x3c8] sm:$0xff] }
  0x3c   :  { %609 = vmatpush.msrb.mxu0 %v142_v34  ;;  %655 = vmatpush.msrb.mxu2 %v143_v36  ;;  %v404_v25 = vld [vmem:[%s4399_s26 + $0xab0] sm:$0xff]  ;;  %v405_v27 = vld [vmem:[%s4399_s26 + $0xab8] sm:$0xff]  ;;  %v170_v28 = vld [vmem:[%s4399_s26 + $0x360] sm:$0xff] }
  0x3d   :  { %632 = vmatpush.msrb.mxu1 %v350_v39  ;;  %678 = vmatpush.msrb.mxu3 %v351_v41  ;;  %v184_v26 = vld [vmem:[%s4399_s26 + $0x3d0] sm:$0xff]  ;;  %v391_v29 = vld [vmem:[%s4399_s26 + $0xa48] sm:$0xff]  ;;  %v157_v32 = vld [vmem:[%s4399_s26 + $0x2f8] sm:$0xff] }
  0x3e   :  { %610 = vmatpush.msrb.mxu0 %v129_v38  ;;  %656 = vmatpush.msrb.mxu2 %v130_v40  ;;  %v171_v30 = vld [vmem:[%s4399_s26 + $0x368] sm:$0xff]  ;;  %v392_v31 = vld [vmem:[%s4399_s26 + $0xa50] sm:$0xff]  ;;  %v378_v33 = vld [vmem:[%s4399_s26 + $0x9e0] sm:$0xff] }
  0x3f   :  { %633 = vmatpush.msrb.mxu1 %v337_v43  ;;  %679 = vmatpush.msrb.mxu3 %v338_v45  ;;  %v158_v34 = vld [vmem:[%s4399_s26 + $0x300] sm:$0xff]  ;;  %v379_v35 = vld [vmem:[%s4399_s26 + $0x9e8] sm:$0xff]  ;;  %v144_v36 = vld [vmem:[%s4399_s26 + $0x290] sm:$0xff] }
  0x40   :  { %611 = vmatpush.msrb.mxu0 %v116_v42  ;;  %657 = vmatpush.msrb.mxu2 %v117_v44  ;;  %v365_v37 = vld [vmem:[%s4399_s26 + $0x978] sm:$0xff]  ;;  %v366_v39 = vld [vmem:[%s4399_s26 + $0x980] sm:$0xff]  ;;  %v131_v40 = vld [vmem:[%s4399_s26 + $0x228] sm:$0xff] }
  0x41   :  { %634 = vmatpush.msrb.mxu1 %v324_v47  ;;  %680 = vmatpush.msrb.mxu3 %v325_v49  ;;  %v145_v38 = vld [vmem:[%s4399_s26 + $0x298] sm:$0xff]  ;;  %v352_v41 = vld [vmem:[%s4399_s26 + $0x910] sm:$0xff]  ;;  %v2630_v44 = vld [vmem:[%s4379_s1] sm:$0xff] }
  0x42   :  { %612 = vmatpush.msrb.mxu0 %v103_v46  ;;  %658 = vmatpush.msrb.mxu2 %v104_v48  ;;  %v132_v42 = vld [vmem:[%s4399_s26 + $0x230] sm:$0xff]  ;;  %v353_v43 = vld [vmem:[%s4399_s26 + $0x918] sm:$0xff]  ;;  %v118_v45 = vld [vmem:[%s4399_s26 + $0x1c0] sm:$0xff] }
  0x43   :  { %635 = vmatpush.msrb.mxu1 %v311_v51  ;;  %681 = vmatpush.msrb.mxu3 %v312_v53  ;;  %v339_v46 = vld [vmem:[%s4399_s26 + $0x8a8] sm:$0xff]  ;;  %v340_v48 = vld [vmem:[%s4399_s26 + $0x8b0] sm:$0xff]  ;;  %v326_v51 = vld [vmem:[%s4399_s26 + $0x840] sm:$0xff] }
  0x44   :  { %613 = vmatpush.msrb.mxu0 %v90_v50  ;;  %659 = vmatpush.msrb.mxu2 %v91_v52  ;;  %v119_v47 = vld [vmem:[%s4399_s26 + $0x1c8] sm:$0xff]  ;;  %v105_v50 = vld [vmem:[%s4399_s26 + $0x158] sm:$0xff]  ;;  %v106_v52 = vld [vmem:[%s4399_s26 + $0x160] sm:$0xff] }
  0x45   :  { %636 = vmatpush.msrb.mxu1 %v298_v55  ;;  %682 = vmatpush.msrb.mxu3 %v299_v57  ;;  %v2648_v49 = vld [vmem:[%s4379_s1 + $0x8] sm:$0xff]  ;;  %v313_v55 = vld [vmem:[%s4399_s26 + $0x7d8] sm:$0xff]  ;;  %v314_v57 = vld [vmem:[%s4399_s26 + $0x7e0] sm:$0xff] }
  0x46   :  { %614 = vmatpush.msrb.mxu0 %v77_v54  ;;  %660 = vmatpush.msrb.mxu2 %v78_v56  ;;  %v327_v53 = vld [vmem:[%s4399_s26 + $0x848] sm:$0xff]  ;;  %v92_v54 = vld [vmem:[%s4399_s26 + $0xf0] sm:$0xff]  ;;  %v93_v56 = vld [vmem:[%s4399_s26 + $0xf8] sm:$0xff] }
  0x47   :  { %637 = vmatpush.msrb.mxu1 %v285_v59  ;;  %683 = vmatpush.msrb.mxu3 %v286_v61  ;;  %v300_v59 = vld [vmem:[%s4399_s26 + $0x770] sm:$0xff]  ;;  %v301_v61 = vld [vmem:[%s4399_s26 + $0x778] sm:$0xff] }
  0x48   :  { %615 = vmatpush.msrb.mxu0 %v64_v58  ;;  %661 = vmatpush.msrb.mxu2 %v65_v60  ;;  %v79_v58 = vld [vmem:[%s4399_s26 + $0x88] sm:$0xff]  ;;  %v80_v60 = vld [vmem:[%s4399_s26 + $0x90] sm:$0xff] }
  0x49   :  { %524 = vmatmul.f32.vlgmr.msra.gmra.mxu0 %v2484_v62  ;;  %570 = vmatmul.f32.vlgmr.msra.gmra.mxu2 %v2484_v62 }
  0x4a   :  { %692 = vmatpush.msra.mxu0 %v261_v63  ;;  %738 = vmatpush.msra.mxu2 %v262_v0  ;;  %v66_v63 = vld [vmem:[%s4399_s26 + $0x20] sm:$0xff]  ;;  %v287_v0 = vld [vmem:[%s4399_s26 + $0x708] sm:$0xff] }
  0x4b   :  { %638 = vmatpush.msrb.mxu1 %v272_v1  ;;  %684 = vmatpush.msrb.mxu3 %v273_v2  ;;  %v67_v1 = vld [vmem:[%s4399_s26 + $0x28] sm:$0xff]  ;;  %v288_v2 = vld [vmem:[%s4399_s26 + $0x710] sm:$0xff] }
  0x4c   :  { %547 = vmatmul.f32.vlgmr.msra.gmra.mxu1 %v2503_v3  ;;  %593 = vmatmul.f32.vlgmr.msra.gmra.mxu3 %v2503_v3 }
  0x4d   :  { %693 = vmatpush.msra.mxu0 %v248_v4  ;;  %715 = vmatpush.msra.mxu1 %v469_v5  ;;  %v263_v4 = vld [vmem:[%s4399_s26 + $0x648] sm:$0xff]  ;;  %v264_v5 = vld [vmem:[%s4399_s26 + $0x650] sm:$0xff] }
  0x4e   :  { %739 = vmatpush.msra.mxu2 %v249_v6  ;;  %761 = vmatpush.msra.mxu3 %v470_v7  ;;  %v274_v6 = vld [vmem:[%s4399_s26 + $0x6a0] sm:$0xff]  ;;  %v275_v7 = vld [vmem:[%s4399_s26 + $0x6a8] sm:$0xff] }
  0x4f   :  { %694 = vmatpush.msra.mxu0 %v235_v8  ;;  %716 = vmatpush.msra.mxu1 %v456_v9  ;;  %v250_v8 = vld [vmem:[%s4399_s26 + $0x5e0] sm:$0xff]  ;;  %v471_v9 = vld [vmem:[%s4399_s26 + $0xcc8] sm:$0xff] }
  0x50   :  { %740 = vmatpush.msra.mxu2 %v236_v10  ;;  %762 = vmatpush.msra.mxu3 %v457_v11  ;;  %v251_v10 = vld [vmem:[%s4399_s26 + $0x5e8] sm:$0xff]  ;;  %v472_v11 = vld [vmem:[%s4399_s26 + $0xcd0] sm:$0xff] }
  0x51   :  { %695 = vmatpush.msra.mxu0 %v222_v12  ;;  %717 = vmatpush.msra.mxu1 %v443_v13  ;;  %v237_v12 = vld [vmem:[%s4399_s26 + $0x578] sm:$0xff]  ;;  %v458_v13 = vld [vmem:[%s4399_s26 + $0xc60] sm:$0xff] }
  0x52   :  { %741 = vmatpush.msra.mxu2 %v223_v14  ;;  %763 = vmatpush.msra.mxu3 %v444_v15  ;;  %v238_v14 = vld [vmem:[%s4399_s26 + $0x580] sm:$0xff]  ;;  %v459_v15 = vld [vmem:[%s4399_s26 + $0xc68] sm:$0xff] }
  0x53   :  { %696 = vmatpush.msra.mxu0 %v209_v16  ;;  %718 = vmatpush.msra.mxu1 %v430_v17  ;;  %v224_v16 = vld [vmem:[%s4399_s26 + $0x510] sm:$0xff]  ;;  %v445_v17 = vld [vmem:[%s4399_s26 + $0xbf8] sm:$0xff] }
  0x54   :  { %742 = vmatpush.msra.mxu2 %v210_v18  ;;  %764 = vmatpush.msra.mxu3 %v431_v19  ;;  %v225_v18 = vld [vmem:[%s4399_s26 + $0x518] sm:$0xff]  ;;  %v446_v19 = vld [vmem:[%s4399_s26 + $0xc00] sm:$0xff] }
  0x55   :  { %697 = vmatpush.msra.mxu0 %v196_v20  ;;  %719 = vmatpush.msra.mxu1 %v417_v21  ;;  %v211_v20 = vld [vmem:[%s4399_s26 + $0x4a8] sm:$0xff]  ;;  %v432_v21 = vld [vmem:[%s4399_s26 + $0xb90] sm:$0xff] }
  0x56   :  { %743 = vmatpush.msra.mxu2 %v197_v22  ;;  %765 = vmatpush.msra.mxu3 %v418_v23  ;;  %v212_v22 = vld [vmem:[%s4399_s26 + $0x4b0] sm:$0xff]  ;;  %v433_v23 = vld [vmem:[%s4399_s26 + $0xb98] sm:$0xff] }
  0x57   :  { %698 = vmatpush.msra.mxu0 %v183_v24  ;;  %720 = vmatpush.msra.mxu1 %v404_v25  ;;  %v419_v24 = vld [vmem:[%s4399_s26 + $0xb28] sm:$0xff]  ;;  %v198_v25 = vld [vmem:[%s4399_s26 + $0x440] sm:$0xff] }
  0x58   :  { %744 = vmatpush.msra.mxu2 %v184_v26  ;;  %766 = vmatpush.msra.mxu3 %v405_v27  ;;  %v199_v26 = vld [vmem:[%s4399_s26 + $0x448] sm:$0xff]  ;;  %v420_v27 = vld [vmem:[%s4399_s26 + $0xb30] sm:$0xff] }
  0x59   :  { %699 = vmatpush.msra.mxu0 %v170_v28  ;;  %721 = vmatpush.msra.mxu1 %v391_v29  ;;  %v185_v28 = vld [vmem:[%s4399_s26 + $0x3d8] sm:$0xff]  ;;  %v406_v29 = vld [vmem:[%s4399_s26 + $0xac0] sm:$0xff] }
  0x5a   :  { %745 = vmatpush.msra.mxu2 %v171_v30  ;;  %767 = vmatpush.msra.mxu3 %v392_v31  ;;  %v186_v30 = vld [vmem:[%s4399_s26 + $0x3e0] sm:$0xff]  ;;  %v407_v31 = vld [vmem:[%s4399_s26 + $0xac8] sm:$0xff] }
  0x5b   :  { %700 = vmatpush.msra.mxu0 %v157_v32  ;;  %722 = vmatpush.msra.mxu1 %v378_v33  ;;  %v172_v32 = vld [vmem:[%s4399_s26 + $0x370] sm:$0xff]  ;;  %v393_v33 = vld [vmem:[%s4399_s26 + $0xa58] sm:$0xff] }
  0x5c   :  { %746 = vmatpush.msra.mxu2 %v158_v34  ;;  %768 = vmatpush.msra.mxu3 %v379_v35  ;;  %v173_v34 = vld [vmem:[%s4399_s26 + $0x378] sm:$0xff]  ;;  %v394_v35 = vld [vmem:[%s4399_s26 + $0xa60] sm:$0xff] }
  0x5d   :  { %701 = vmatpush.msra.mxu0 %v144_v36  ;;  %723 = vmatpush.msra.mxu1 %v365_v37  ;;  %v159_v36 = vld [vmem:[%s4399_s26 + $0x308] sm:$0xff]  ;;  %v380_v37 = vld [vmem:[%s4399_s26 + $0x9f0] sm:$0xff] }
  0x5e   :  { %747 = vmatpush.msra.mxu2 %v145_v38  ;;  %769 = vmatpush.msra.mxu3 %v366_v39  ;;  %v160_v38 = vld [vmem:[%s4399_s26 + $0x310] sm:$0xff]  ;;  %v381_v39 = vld [vmem:[%s4399_s26 + $0x9f8] sm:$0xff] }
  0x5f   :  { %702 = vmatpush.msra.mxu0 %v131_v40  ;;  %724 = vmatpush.msra.mxu1 %v352_v41  ;;  %v367_v40 = vld [vmem:[%s4399_s26 + $0x988] sm:$0xff]  ;;  %v146_v41 = vld [vmem:[%s4399_s26 + $0x2a0] sm:$0xff] }
  0x60   :  { %748 = vmatpush.msra.mxu2 %v132_v42  ;;  %770 = vmatpush.msra.mxu3 %v353_v43  ;;  %v147_v42 = vld [vmem:[%s4399_s26 + $0x2a8] sm:$0xff]  ;;  %v368_v43 = vld [vmem:[%s4399_s26 + $0x990] sm:$0xff] }
  0x61   :  { %573 = vmatmul.f32.gmra.mxu2 %v2630_v44  ;;  %703 = vmatpush.msra.mxu0 %v118_v45  ;;  %v133_v45 = vld [vmem:[%s4399_s26 + $0x238] sm:$0xff] }
  0x62   :  { %725 = vmatpush.msra.mxu1 %v339_v46  ;;  %749 = vmatpush.msra.mxu2 %v119_v47  ;;  %v354_v46 = vld [vmem:[%s4399_s26 + $0x920] sm:$0xff] }
  0x63   :  { %771 = vmatpush.msra.mxu3 %v340_v48  ;;  %527 = vmatmul.f32.gmra.mxu0 %v2630_v44  ;;  %v134_v47 = vld [vmem:[%s4399_s26 + $0x240] sm:$0xff]  ;;  %v355_v48 = vld [vmem:[%s4399_s26 + $0x928] sm:$0xff] }
  0x64   :  { %596 = vmatmul.f32.gmra.mxu3 %v2648_v49  ;;  %704 = vmatpush.msra.mxu0 %v105_v50  ;;  %v120_v50 = vld [vmem:[%s4399_s26 + $0x1d0] sm:$0xff] }
  0x65   :  { %726 = vmatpush.msra.mxu1 %v326_v51  ;;  %750 = vmatpush.msra.mxu2 %v106_v52  ;;  %v341_v51 = vld [vmem:[%s4399_s26 + $0x8b8] sm:$0xff] }
  0x66   :  { %772 = vmatpush.msra.mxu3 %v327_v53  ;;  %550 = vmatmul.f32.gmra.mxu1 %v2648_v49  ;;  %v121_v52 = vld [vmem:[%s4399_s26 + $0x1d8] sm:$0xff]  ;;  %v342_v53 = vld [vmem:[%s4399_s26 + $0x8c0] sm:$0xff] }
  0x67   :  { %705 = vmatpush.msra.mxu0 %v92_v54  ;;  %727 = vmatpush.msra.mxu1 %v313_v55  ;;  %v107_v54 = vld [vmem:[%s4399_s26 + $0x168] sm:$0xff]  ;;  %v328_v55 = vld [vmem:[%s4399_s26 + $0x850] sm:$0xff] }
  0x68   :  { %751 = vmatpush.msra.mxu2 %v93_v56  ;;  %773 = vmatpush.msra.mxu3 %v314_v57  ;;  %v108_v56 = vld [vmem:[%s4399_s26 + $0x170] sm:$0xff]  ;;  %v329_v57 = vld [vmem:[%s4399_s26 + $0x858] sm:$0xff] }
  0x69   :  { %706 = vmatpush.msra.mxu0 %v79_v58  ;;  %728 = vmatpush.msra.mxu1 %v300_v59  ;;  %v315_v58 = vld [vmem:[%s4399_s26 + $0x7e8] sm:$0xff]  ;;  %v94_v59 = vld [vmem:[%s4399_s26 + $0x100] sm:$0xff] }
  0x6a   :  { %752 = vmatpush.msra.mxu2 %v80_v60  ;;  %774 = vmatpush.msra.mxu3 %v301_v61  ;;  %v95_v60 = vld [vmem:[%s4399_s26 + $0x108] sm:$0xff]  ;;  %v316_v61 = vld [vmem:[%s4399_s26 + $0x7f0] sm:$0xff] }
  0x6b   :  { %662 = vmatmul.f32.vlgmr.msrb.gmra.mxu2 %v2484_v62  ;;  %707 = vmatpush.msra.mxu0 %v66_v63  ;;  %v81_v63 = vld [vmem:[%s4399_s26 + $0x98] sm:$0xff] }
  0x6c   :  { %729 = vmatpush.msra.mxu1 %v287_v0  ;;  %753 = vmatpush.msra.mxu2 %v67_v1  ;;  %v302_v0 = vld [vmem:[%s4399_s26 + $0x780] sm:$0xff] }
  0x6d   :  { %775 = vmatpush.msra.mxu3 %v288_v2  ;;  %616 = vmatmul.f32.vlgmr.msrb.gmra.mxu0 %v2484_v62  ;;  %v82_v1 = vld [vmem:[%s4399_s26 + $0xa0] sm:$0xff]  ;;  %v303_v2 = vld [vmem:[%s4399_s26 + $0x788] sm:$0xff] }
  0x6e   :  { %685 = vmatmul.f32.vlgmr.msrb.gmra.mxu3 %v2503_v3  ;;  %784 = vmatpush.msrb.mxu0 %v263_v4  ;;  %v68_v4 = vld [vmem:[%s4399_s26 + $0x30] sm:$0xff] }
  0x6f   :  { %830 = vmatpush.msrb.mxu2 %v264_v5  ;;  %730 = vmatpush.msra.mxu1 %v274_v6  ;;  %v289_v5 = vld [vmem:[%s4399_s26 + $0x718] sm:$0xff] }
  0x70   :  { %776 = vmatpush.msra.mxu3 %v275_v7  ;;  %639 = vmatmul.f32.vlgmr.msrb.gmra.mxu1 %v2503_v3  ;;  %v69_v6 = vld [vmem:[%s4399_s26 + $0x38] sm:$0xff]  ;;  %v290_v7 = vld [vmem:[%s4399_s26 + $0x720] sm:$0xff] }
  0x71   :  { %785 = vmatpush.msrb.mxu0 %v250_v8  ;;  %807 = vmatpush.msrb.mxu1 %v471_v9  ;;  %v265_v8 = vld [vmem:[%s4399_s26 + $0x658] sm:$0xff]  ;;  %v266_v9 = vld [vmem:[%s4399_s26 + $0x660] sm:$0xff] }
  0x72   :  { %831 = vmatpush.msrb.mxu2 %v251_v10  ;;  %853 = vmatpush.msrb.mxu3 %v472_v11  ;;  %v276_v10 = vld [vmem:[%s4399_s26 + $0x6b0] sm:$0xff]  ;;  %v277_v11 = vld [vmem:[%s4399_s26 + $0x6b8] sm:$0xff] }
  0x73   :  { %786 = vmatpush.msrb.mxu0 %v237_v12  ;;  %808 = vmatpush.msrb.mxu1 %v458_v13  ;;  %v252_v12 = vld [vmem:[%s4399_s26 + $0x5f0] sm:$0xff]  ;;  %v473_v13 = vld [vmem:[%s4399_s26 + $0xcd8] sm:$0xff] }
  0x74   :  { %832 = vmatpush.msrb.mxu2 %v238_v14  ;;  %854 = vmatpush.msrb.mxu3 %v459_v15  ;;  %v253_v14 = vld [vmem:[%s4399_s26 + $0x5f8] sm:$0xff]  ;;  %v474_v15 = vld [vmem:[%s4399_s26 + $0xce0] sm:$0xff] }
  0x75   :  { %665 = vmatmul.f32.gmra.mxu2 %v2630_v44  ;;  %787 = vmatpush.msrb.mxu0 %v224_v16  ;;  %v239_v16 = vld [vmem:[%s4399_s26 + $0x588] sm:$0xff] }
  0x76   :  { %809 = vmatpush.msrb.mxu1 %v445_v17  ;;  %833 = vmatpush.msrb.mxu2 %v225_v18  ;;  %v460_v17 = vld [vmem:[%s4399_s26 + $0xc70] sm:$0xff] }
  0x77   :  { %855 = vmatpush.msrb.mxu3 %v446_v19  ;;  %788 = vmatpush.msrb.mxu0 %v211_v20  ;;  %v240_v18 = vld [vmem:[%s4399_s26 + $0x590] sm:$0xff]  ;;  %v461_v19 = vld [vmem:[%s4399_s26 + $0xc78] sm:$0xff]  ;;  %v226_v20 = vld [vmem:[%s4399_s26 + $0x520] sm:$0xff] }
  0x78   :  { %688 = vmatmul.f32.gmra.mxu3 %v2648_v49  ;;  %810 = vmatpush.msrb.mxu1 %v432_v21  ;;  %v447_v21 = vld [vmem:[%s4399_s26 + $0xc08] sm:$0xff] }
  0x79   :  { %834 = vmatpush.msrb.mxu2 %v212_v22  ;;  %856 = vmatpush.msrb.mxu3 %v433_v23  ;;  %v227_v22 = vld [vmem:[%s4399_s26 + $0x528] sm:$0xff]  ;;  %v448_v23 = vld [vmem:[%s4399_s26 + $0xc10] sm:$0xff] }
  0x7a   :  { %619 = vmatmul.f32.gmra.mxu0 %v2630_v44  ;;  %811 = vmatpush.msrb.mxu1 %v419_v24  ;;  %v213_v24 = vld [vmem:[%s4399_s26 + $0x4b8] sm:$0xff] }
  0x7b   :  { %789 = vmatpush.msrb.mxu0 %v198_v25  ;;  %835 = vmatpush.msrb.mxu2 %v199_v26  ;;  %v434_v25 = vld [vmem:[%s4399_s26 + $0xba0] sm:$0xff] }
  0x7c   :  { %857 = vmatpush.msrb.mxu3 %v420_v27  ;;  %642 = vmatmul.f32.gmra.mxu1 %v2648_v49  ;;  %v214_v26 = vld [vmem:[%s4399_s26 + $0x4c0] sm:$0xff]  ;;  %v435_v27 = vld [vmem:[%s4399_s26 + $0xba8] sm:$0xff] }
  0x7d   :  { %790 = vmatpush.msrb.mxu0 %v185_v28  ;;  %812 = vmatpush.msrb.mxu1 %v406_v29  ;;  %v200_v28 = vld [vmem:[%s4399_s26 + $0x450] sm:$0xff]  ;;  %v421_v29 = vld [vmem:[%s4399_s26 + $0xb38] sm:$0xff] }
  0x7e   :  { %836 = vmatpush.msrb.mxu2 %v186_v30  ;;  %858 = vmatpush.msrb.mxu3 %v407_v31  ;;  %v201_v30 = vld [vmem:[%s4399_s26 + $0x458] sm:$0xff]  ;;  %v422_v31 = vld [vmem:[%s4399_s26 + $0xb40] sm:$0xff] }
  0x7f   :  { %754 = vmatmul.f32.vlgmr.msra.gmra.mxu2 %v2484_v62  ;;  %791 = vmatpush.msrb.mxu0 %v172_v32  ;;  %v187_v32 = vld [vmem:[%s4399_s26 + $0x3e8] sm:$0xff] }
  0x80   :  { %813 = vmatpush.msrb.mxu1 %v393_v33  ;;  %837 = vmatpush.msrb.mxu2 %v173_v34  ;;  %v408_v33 = vld [vmem:[%s4399_s26 + $0xad0] sm:$0xff] }
  0x81   :  { %859 = vmatpush.msrb.mxu3 %v394_v35  ;;  %792 = vmatpush.msrb.mxu0 %v159_v36  ;;  %v188_v34 = vld [vmem:[%s4399_s26 + $0x3f0] sm:$0xff]  ;;  %v409_v35 = vld [vmem:[%s4399_s26 + $0xad8] sm:$0xff]  ;;  %v174_v36 = vld [vmem:[%s4399_s26 + $0x380] sm:$0xff] }
  0x82   :  { %777 = vmatmul.f32.vlgmr.msra.gmra.mxu3 %v2503_v3  ;;  %814 = vmatpush.msrb.mxu1 %v380_v37  ;;  %v395_v37 = vld [vmem:[%s4399_s26 + $0xa68] sm:$0xff] }
  0x83   :  { %838 = vmatpush.msrb.mxu2 %v160_v38  ;;  %860 = vmatpush.msrb.mxu3 %v381_v39  ;;  %v175_v38 = vld [vmem:[%s4399_s26 + $0x388] sm:$0xff]  ;;  %v396_v39 = vld [vmem:[%s4399_s26 + $0xa70] sm:$0xff] }
  0x84   :  { %708 = vmatmul.f32.vlgmr.msra.gmra.mxu0 %v2484_v62  ;;  %815 = vmatpush.msrb.mxu1 %v367_v40  ;;  %v161_v40 = vld [vmem:[%s4399_s26 + $0x318] sm:$0xff] }
  0x85   :  { %793 = vmatpush.msrb.mxu0 %v146_v41  ;;  %839 = vmatpush.msrb.mxu2 %v147_v42  ;;  %v382_v41 = vld [vmem:[%s4399_s26 + $0xa00] sm:$0xff] }
  0x86   :  { %861 = vmatpush.msrb.mxu3 %v368_v43  ;;  %731 = vmatmul.f32.vlgmr.msra.gmra.mxu1 %v2503_v3  ;;  %v162_v42 = vld [vmem:[%s4399_s26 + $0x320] sm:$0xff]  ;;  %v383_v43 = vld [vmem:[%s4399_s26 + $0xa08] sm:$0xff] }
  0x87   :  { %794 = vmatpush.msrb.mxu0 %v133_v45  ;;  %816 = vmatpush.msrb.mxu1 %v354_v46  ;;  %v148_v45 = vld [vmem:[%s4399_s26 + $0x2b0] sm:$0xff]  ;;  %v369_v46 = vld [vmem:[%s4399_s26 + $0x998] sm:$0xff] }
  0x88   :  { %840 = vmatpush.msrb.mxu2 %v134_v47  ;;  %862 = vmatpush.msrb.mxu3 %v355_v48  ;;  %v149_v47 = vld [vmem:[%s4399_s26 + $0x2b8] sm:$0xff]  ;;  %v370_v48 = vld [vmem:[%s4399_s26 + $0x9a0] sm:$0xff] }
  0x89   :  { %757 = vmatmul.f32.gmra.mxu2 %v2630_v44  ;;  %795 = vmatpush.msrb.mxu0 %v120_v50  ;;  %v135_v50 = vld [vmem:[%s4399_s26 + $0x248] sm:$0xff] }
  0x8a   :  { %817 = vmatpush.msrb.mxu1 %v341_v51  ;;  %841 = vmatpush.msrb.mxu2 %v121_v52  ;;  %v356_v51 = vld [vmem:[%s4399_s26 + $0x930] sm:$0xff] }
  0x8b   :  { %863 = vmatpush.msrb.mxu3 %v342_v53  ;;  %796 = vmatpush.msrb.mxu0 %v107_v54  ;;  %v136_v52 = vld [vmem:[%s4399_s26 + $0x250] sm:$0xff]  ;;  %v357_v53 = vld [vmem:[%s4399_s26 + $0x938] sm:$0xff]  ;;  %v122_v54 = vld [vmem:[%s4399_s26 + $0x1e0] sm:$0xff] }
  0x8c   :  { %780 = vmatmul.f32.gmra.mxu3 %v2648_v49  ;;  %818 = vmatpush.msrb.mxu1 %v328_v55  ;;  %v343_v55 = vld [vmem:[%s4399_s26 + $0x8c8] sm:$0xff] }
  0x8d   :  { %842 = vmatpush.msrb.mxu2 %v108_v56  ;;  %864 = vmatpush.msrb.mxu3 %v329_v57  ;;  %v123_v56 = vld [vmem:[%s4399_s26 + $0x1e8] sm:$0xff]  ;;  %v344_v57 = vld [vmem:[%s4399_s26 + $0x8d0] sm:$0xff] }
  0x8e   :  { %711 = vmatmul.f32.gmra.mxu0 %v2630_v44  ;;  %819 = vmatpush.msrb.mxu1 %v315_v58  ;;  %v109_v58 = vld [vmem:[%s4399_s26 + $0x178] sm:$0xff] }
  0x8f   :  { %797 = vmatpush.msrb.mxu0 %v94_v59  ;;  %843 = vmatpush.msrb.mxu2 %v95_v60  ;;  %v330_v59 = vld [vmem:[%s4399_s26 + $0x860] sm:$0xff] }
  0x90   :  { %865 = vmatpush.msrb.mxu3 %v316_v61  ;;  %734 = vmatmul.f32.gmra.mxu1 %v2648_v49  ;;  %v110_v60 = vld [vmem:[%s4399_s26 + $0x180] sm:$0xff]  ;;  %v331_v61 = vld [vmem:[%s4399_s26 + $0x868] sm:$0xff] }
  0x91   :  { %798 = vmatpush.msrb.mxu0 %v81_v63  ;;  %820 = vmatpush.msrb.mxu1 %v302_v0  ;;  %v96_v63 = vld [vmem:[%s4399_s26 + $0x110] sm:$0xff]  ;;  %v317_v0 = vld [vmem:[%s4399_s26 + $0x7f8] sm:$0xff] }
  0x92   :  { %844 = vmatpush.msrb.mxu2 %v82_v1  ;;  %866 = vmatpush.msrb.mxu3 %v303_v2  ;;  %v97_v1 = vld [vmem:[%s4399_s26 + $0x118] sm:$0xff]  ;;  %v318_v2 = vld [vmem:[%s4399_s26 + $0x800] sm:$0xff] }
  0x93   :  { %799 = vmatpush.msrb.mxu0 %v68_v4  ;;  %821 = vmatpush.msrb.mxu1 %v289_v5  ;;  %v83_v4 = vld [vmem:[%s4399_s26 + $0xa8] sm:$0xff]  ;;  %v304_v5 = vld [vmem:[%s4399_s26 + $0x790] sm:$0xff] }
  0x94   :  { %845 = vmatpush.msrb.mxu2 %v69_v6  ;;  %867 = vmatpush.msrb.mxu3 %v290_v7  ;;  %v84_v6 = vld [vmem:[%s4399_s26 + $0xb0] sm:$0xff]  ;;  %v305_v7 = vld [vmem:[%s4399_s26 + $0x798] sm:$0xff] }
  0x95   :  { %876 = vmatpush.msra.mxu0 %v265_v8  ;;  %822 = vmatpush.msrb.mxu1 %v276_v10  ;;  %v70_v8 = vld [vmem:[%s4399_s26 + $0x40] sm:$0xff]  ;;  %v71_v10 = vld [vmem:[%s4399_s26 + $0x48] sm:$0xff] }
  0x96   :  { %922 = vmatpush.msra.mxu2 %v266_v9  ;;  %868 = vmatpush.msrb.mxu3 %v277_v11  ;;  %v291_v9 = vld [vmem:[%s4399_s26 + $0x728] sm:$0xff]  ;;  %v292_v11 = vld [vmem:[%s4399_s26 + $0x730] sm:$0xff] }
  0x97   :  { %877 = vmatpush.msra.mxu0 %v252_v12  ;;  %899 = vmatpush.msra.mxu1 %v473_v13  ;;  %v267_v12 = vld [vmem:[%s4399_s26 + $0x668] sm:$0xff]  ;;  %v268_v13 = vld [vmem:[%s4399_s26 + $0x670] sm:$0xff] }
  0x98   :  { %923 = vmatpush.msra.mxu2 %v253_v14  ;;  %945 = vmatpush.msra.mxu3 %v474_v15  ;;  %v278_v14 = vld [vmem:[%s4399_s26 + $0x6c0] sm:$0xff]  ;;  %v279_v15 = vld [vmem:[%s4399_s26 + $0x6c8] sm:$0xff] }
  0x99   :  { %878 = vmatpush.msra.mxu0 %v239_v16  ;;  %900 = vmatpush.msra.mxu1 %v460_v17  ;;  %v254_v16 = vld [vmem:[%s4399_s26 + $0x600] sm:$0xff]  ;;  %v475_v17 = vld [vmem:[%s4399_s26 + $0xce8] sm:$0xff] }
  0x9a   :  { %924 = vmatpush.msra.mxu2 %v240_v18  ;;  %946 = vmatpush.msra.mxu3 %v461_v19  ;;  %v255_v18 = vld [vmem:[%s4399_s26 + $0x608] sm:$0xff]  ;;  %v241_v19 = vld [vmem:[%s4399_s26 + $0x598] sm:$0xff] }
  0x9b   :  { %879 = vmatpush.msra.mxu0 %v226_v20  ;;  %901 = vmatpush.msra.mxu1 %v447_v21  ;;  %v462_v20 = vld [vmem:[%s4399_s26 + $0xc80] sm:$0xff] }
  0x9c   :  { %925 = vmatpush.msra.mxu2 %v227_v22  ;;  %947 = vmatpush.msra.mxu3 %v448_v23  ;;  %v242_v21 = vld [vmem:[%s4399_s26 + $0x5a0] sm:$0xff]  ;;  %v463_v22 = vld [vmem:[%s4399_s26 + $0xc88] sm:$0xff]  ;;  %v449_v23 = vld [vmem:[%s4399_s26 + $0xc18] sm:$0xff] }
  0x9d   :  { %880 = vmatpush.msra.mxu0 %v213_v24  ;;  %902 = vmatpush.msra.mxu1 %v434_v25  ;;  %v229_v24 = vld [vmem:[%s4399_s26 + $0x538] sm:$0xff]  ;;  %v450_v25 = vld [vmem:[%s4399_s26 + $0xc20] sm:$0xff] }
  0x9e   :  { %926 = vmatpush.msra.mxu2 %v214_v26  ;;  %948 = vmatpush.msra.mxu3 %v435_v27  ;;  %v215_v26 = vld [vmem:[%s4399_s26 + $0x4c8] sm:$0xff]  ;;  %v436_v27 = vld [vmem:[%s4399_s26 + $0xbb0] sm:$0xff] }
  0x9f   :  { %881 = vmatpush.msra.mxu0 %v200_v28  ;;  %903 = vmatpush.msra.mxu1 %v421_v29  ;;  %v216_v28 = vld [vmem:[%s4399_s26 + $0x4d0] sm:$0xff]  ;;  %v437_v29 = vld [vmem:[%s4399_s26 + $0xbb8] sm:$0xff] }
  0xa0   :  { %927 = vmatpush.msra.mxu2 %v201_v30  ;;  %949 = vmatpush.msra.mxu3 %v422_v31  ;;  %v202_v30 = vld [vmem:[%s4399_s26 + $0x460] sm:$0xff]  ;;  %v423_v31 = vld [vmem:[%s4399_s26 + $0xb48] sm:$0xff] }
  0xa1   :  { %882 = vmatpush.msra.mxu0 %v187_v32  ;;  %904 = vmatpush.msra.mxu1 %v408_v33  ;;  %v203_v32 = vld [vmem:[%s4399_s26 + $0x468] sm:$0xff]  ;;  %v424_v33 = vld [vmem:[%s4399_s26 + $0xb50] sm:$0xff] }
  0xa2   :  { %928 = vmatpush.msra.mxu2 %v188_v34  ;;  %950 = vmatpush.msra.mxu3 %v409_v35  ;;  %v189_v34 = vld [vmem:[%s4399_s26 + $0x3f8] sm:$0xff]  ;;  %v410_v35 = vld [vmem:[%s4399_s26 + $0xae0] sm:$0xff] }
  0xa3   :  { %846 = vmatmul.f32.vlgmr.msrb.gmra.mxu2 %v2484_v62  ;;  %883 = vmatpush.msra.mxu0 %v174_v36  ;;  %v190_v36 = vld [vmem:[%s4399_s26 + $0x400] sm:$0xff] }
  0xa4   :  { %905 = vmatpush.msra.mxu1 %v395_v37  ;;  %929 = vmatpush.msra.mxu2 %v175_v38  ;;  %v411_v37 = vld [vmem:[%s4399_s26 + $0xae8] sm:$0xff]  ;;  %v176_v38 = vld [vmem:[%s4399_s26 + $0x390] sm:$0xff] }
  0xa5   :  { %951 = vmatpush.msra.mxu3 %v396_v39  ;;  %800 = vmatmul.f32.vlgmr.msrb.gmra.mxu0 %v2484_v62  ;;  %v397_v39 = vld [vmem:[%s4399_s26 + $0xa78] sm:$0xff] }
  0xa6   :  { %869 = vmatmul.f32.vlgmr.msrb.gmra.mxu3 %v2503_v3  ;;  %884 = vmatpush.msra.mxu0 %v161_v40  ;;  %v177_v40 = vld [vmem:[%s4399_s26 + $0x398] sm:$0xff] }
  0xa7   :  { %906 = vmatpush.msra.mxu1 %v382_v41  ;;  %930 = vmatpush.msra.mxu2 %v162_v42  ;;  %v398_v41 = vld [vmem:[%s4399_s26 + $0xa80] sm:$0xff]  ;;  %v163_v42 = vld [vmem:[%s4399_s26 + $0x328] sm:$0xff] }
  0xa8   :  { %952 = vmatpush.msra.mxu3 %v383_v43  ;;  %823 = vmatmul.f32.vlgmr.msrb.gmra.mxu1 %v2503_v3  ;;  %v384_v43 = vld [vmem:[%s4399_s26 + $0xa10] sm:$0xff] }
  0xa9   :  { %885 = vmatpush.msra.mxu0 %v148_v45  ;;  %907 = vmatpush.msra.mxu1 %v369_v46  ;;  %v164_v45 = vld [vmem:[%s4399_s26 + $0x330] sm:$0xff]  ;;  %v385_v46 = vld [vmem:[%s4399_s26 + $0xa18] sm:$0xff] }
  0xaa   :  { %931 = vmatpush.msra.mxu2 %v149_v47  ;;  %953 = vmatpush.msra.mxu3 %v370_v48  ;;  %v150_v47 = vld [vmem:[%s4399_s26 + $0x2c0] sm:$0xff]  ;;  %v371_v48 = vld [vmem:[%s4399_s26 + $0x9a8] sm:$0xff] }
  0xab   :  { %886 = vmatpush.msra.mxu0 %v135_v50  ;;  %908 = vmatpush.msra.mxu1 %v356_v51  ;;  %v151_v50 = vld [vmem:[%s4399_s26 + $0x2c8] sm:$0xff]  ;;  %v372_v51 = vld [vmem:[%s4399_s26 + $0x9b0] sm:$0xff] }
  0xac   :  { %932 = vmatpush.msra.mxu2 %v136_v52  ;;  %954 = vmatpush.msra.mxu3 %v357_v53  ;;  %v137_v52 = vld [vmem:[%s4399_s26 + $0x258] sm:$0xff]  ;;  %v358_v53 = vld [vmem:[%s4399_s26 + $0x940] sm:$0xff] }
  0xad   :  { %849 = vmatmul.f32.gmra.mxu2 %v2630_v44  ;;  %887 = vmatpush.msra.mxu0 %v122_v54  ;;  %v138_v54 = vld [vmem:[%s4399_s26 + $0x260] sm:$0xff] }
  0xae   :  { %909 = vmatpush.msra.mxu1 %v343_v55  ;;  %933 = vmatpush.msra.mxu2 %v123_v56  ;;  %v359_v55 = vld [vmem:[%s4399_s26 + $0x948] sm:$0xff]  ;;  %v124_v56 = vld [vmem:[%s4399_s26 + $0x1f0] sm:$0xff] }
  0xaf   :  { %955 = vmatpush.msra.mxu3 %v344_v57  ;;  %803 = vmatmul.f32.gmra.mxu0 %v2630_v44  ;;  %v345_v57 = vld [vmem:[%s4399_s26 + $0x8d8] sm:$0xff] }
  0xb0   :  { %872 = vmatmul.f32.gmra.mxu3 %v2648_v49  ;;  %888 = vmatpush.msra.mxu0 %v109_v58  ;;  %v125_v58 = vld [vmem:[%s4399_s26 + $0x1f8] sm:$0xff] }
  0xb1   :  { %910 = vmatpush.msra.mxu1 %v330_v59  ;;  %934 = vmatpush.msra.mxu2 %v110_v60  ;;  %v346_v59 = vld [vmem:[%s4399_s26 + $0x8e0] sm:$0xff]  ;;  %v111_v60 = vld [vmem:[%s4399_s26 + $0x188] sm:$0xff] }
  0xb2   :  { %956 = vmatpush.msra.mxu3 %v331_v61  ;;  %826 = vmatmul.f32.gmra.mxu1 %v2648_v49  ;;  %v332_v61 = vld [vmem:[%s4399_s26 + $0x870] sm:$0xff] }
  0xb3   :  { %889 = vmatpush.msra.mxu0 %v96_v63  ;;  %911 = vmatpush.msra.mxu1 %v317_v0  ;;  %v112_v63 = vld [vmem:[%s4399_s26 + $0x190] sm:$0xff]  ;;  %v333_v0 = vld [vmem:[%s4399_s26 + $0x878] sm:$0xff] }
  0xb4   :  { %935 = vmatpush.msra.mxu2 %v97_v1  ;;  %957 = vmatpush.msra.mxu3 %v318_v2  ;;  %v98_v1 = vld [vmem:[%s4399_s26 + $0x120] sm:$0xff]  ;;  %v319_v2 = vld [vmem:[%s4399_s26 + $0x808] sm:$0xff] }
  0xb5   :  { %890 = vmatpush.msra.mxu0 %v83_v4  ;;  %912 = vmatpush.msra.mxu1 %v304_v5  ;;  %v99_v4 = vld [vmem:[%s4399_s26 + $0x128] sm:$0xff]  ;;  %v320_v5 = vld [vmem:[%s4399_s26 + $0x810] sm:$0xff] }
  0xb6   :  { %936 = vmatpush.msra.mxu2 %v84_v6  ;;  %958 = vmatpush.msra.mxu3 %v305_v7  ;;  %v85_v6 = vld [vmem:[%s4399_s26 + $0xb8] sm:$0xff]  ;;  %v306_v7 = vld [vmem:[%s4399_s26 + $0x7a0] sm:$0xff] }
  0xb7   :  { %891 = vmatpush.msra.mxu0 %v70_v8  ;;  %913 = vmatpush.msra.mxu1 %v291_v9  ;;  %v86_v8 = vld [vmem:[%s4399_s26 + $0xc0] sm:$0xff]  ;;  %v307_v9 = vld [vmem:[%s4399_s26 + $0x7a8] sm:$0xff] }
  0xb8   :  { %937 = vmatpush.msra.mxu2 %v71_v10  ;;  %959 = vmatpush.msra.mxu3 %v292_v11  ;;  %v72_v10 = vld [vmem:[%s4399_s26 + $0x50] sm:$0xff]  ;;  %v293_v11 = vld [vmem:[%s4399_s26 + $0x738] sm:$0xff] }
  0xb9   :  { %892 = vmatmul.f32.vlgmr.msra.gmra.mxu0 %v2484_v62  ;;  %938 = vmatmul.f32.vlgmr.msra.gmra.mxu2 %v2484_v62  ;;  %v476_v62 = vld [vmem:[%s4399_s26 + $0xcf0] sm:$0xff] }
  0xba   :  { %968 = vmatpush.msrb.mxu0 %v267_v12  ;;  %1014 = vmatpush.msrb.mxu2 %v268_v13  ;;  %v73_v12 = vld [vmem:[%s4399_s26 + $0x58] sm:$0xff]  ;;  %v294_v13 = vld [vmem:[%s4399_s26 + $0x740] sm:$0xff] }
  0xbb   :  { %914 = vmatpush.msra.mxu1 %v278_v14  ;;  %960 = vmatpush.msra.mxu3 %v279_v15  ;;  %v269_v14 = vld [vmem:[%s4399_s26 + $0x678] sm:$0xff] }
  0xbc   :  { %915 = vmatmul.f32.vlgmr.msra.gmra.mxu1 %v2503_v3  ;;  %961 = vmatmul.f32.vlgmr.msra.gmra.mxu3 %v2503_v3  ;;  %v228_v3 = vld [vmem:[%s4399_s26 + $0x530] sm:$0xff]  ;;  %v1147_v15 = vld [vmem:[%s4380_s4 + $0x78] sm:$0xff] }
  0xbd   :  { %969 = vmatpush.msrb.mxu0 %v254_v16  ;;  %991 = vmatpush.msrb.mxu1 %v475_v17  ;;  %v280_v16 = vld [vmem:[%s4399_s26 + $0x6d0] sm:$0xff]  ;;  %v281_v17 = vld [vmem:[%s4399_s26 + $0x6d8] sm:$0xff] }
  0xbe   :  { %1015 = vmatpush.msrb.mxu2 %v255_v18  ;;  %1037 = vmatpush.msrb.mxu3 %v476_v62  ;;  %v3324_v18 = vld [vmem:[%s4400_s27] sm:$0xff]  ;;  %v256_v62 = vld [vmem:[%s4399_s26 + $0x610] sm:$0xff] }
  0xbf   :  { %970 = vmatpush.msrb.mxu0 %v241_v19  ;;  %992 = vmatpush.msrb.mxu1 %v462_v20  ;;  %v477_v19 = vld [vmem:[%s4399_s26 + $0xcf8] sm:$0xff]  ;;  %v1146_v20 = vld [vmem:[%s4380_s4 + $0x70] sm:$0xff] }
  0xc0   :  { %1016 = vmatpush.msrb.mxu2 %v242_v21  ;;  %1038 = vmatpush.msrb.mxu3 %v463_v22  ;;  %v1163_v21 = vld [vmem:[%s4380_s4 + $0xf8] sm:$0xff]  ;;  %v3343_v22 = vld [vmem:[%s4400_s27 + $0x8] sm:$0xff] }
  0xc1   :  { %971 = vmatpush.msrb.mxu0 %v228_v3  ;;  %993 = vmatpush.msrb.mxu1 %v449_v23  ;;  %v243_v3 = vld [vmem:[%s4399_s26 + $0x5a8] sm:$0xff]  ;;  %v464_v23 = vld [vmem:[%s4399_s26 + $0xc90] sm:$0xff] }
  0xc2   :  { %1017 = vmatpush.msrb.mxu2 %v229_v24  ;;  %1039 = vmatpush.msrb.mxu3 %v450_v25  ;;  %v1145_v24 = vld [vmem:[%s4380_s4 + $0x68] sm:$0xff]  ;;  %v1162_v25 = vld [vmem:[%s4380_s4 + $0xf0] sm:$0xff] }
  0xc3   :  { %895 = vmatmul.f32.gmra.mxu0 %v2630_v44  ;;  %941 = vmatmul.f32.gmra.mxu2 %v2630_v44 }
  0xc4   :  { %972 = vmatpush.msrb.mxu0 %v215_v26  ;;  %994 = vmatpush.msrb.mxu1 %v436_v27  ;;  %v230_v26 = vld [vmem:[%s4399_s26 + $0x540] sm:$0xff]  ;;  %v451_v27 = vld [vmem:[%s4399_s26 + $0xc28] sm:$0xff] }
  0xc5   :  { %1018 = vmatpush.msrb.mxu2 %v216_v28  ;;  %1040 = vmatpush.msrb.mxu3 %v437_v29  ;;  %v1144_v28 = vld [vmem:[%s4380_s4 + $0x60] sm:$0xff]  ;;  %v1161_v29 = vld [vmem:[%s4380_s4 + $0xe8] sm:$0xff] }
  0xc6   :  { %918 = vmatmul.f32.gmra.mxu1 %v2648_v49  ;;  %964 = vmatmul.f32.gmra.mxu3 %v2648_v49 }
  0xc7   :  { %973 = vmatpush.msrb.mxu0 %v202_v30  ;;  %995 = vmatpush.msrb.mxu1 %v423_v31  ;;  %v217_v30 = vld [vmem:[%s4399_s26 + $0x4d8] sm:$0xff]  ;;  %v438_v31 = vld [vmem:[%s4399_s26 + $0xbc0] sm:$0xff] }
  0xc8   :  { %1019 = vmatpush.msrb.mxu2 %v203_v32  ;;  %1041 = vmatpush.msrb.mxu3 %v424_v33  ;;  %v1143_v32 = vld [vmem:[%s4380_s4 + $0x58] sm:$0xff]  ;;  %v1160_v33 = vld [vmem:[%s4380_s4 + $0xe0] sm:$0xff] }
  0xc9   :  { %974 = vmatpush.msrb.mxu0 %v189_v34  ;;  %996 = vmatpush.msrb.mxu1 %v410_v35  ;;  %v204_v34 = vld [vmem:[%s4399_s26 + $0x470] sm:$0xff]  ;;  %v425_v35 = vld [vmem:[%s4399_s26 + $0xb58] sm:$0xff] }
  0xca   :  { %1020 = vmatpush.msrb.mxu2 %v190_v36  ;;  %1042 = vmatpush.msrb.mxu3 %v411_v37  ;;  %v1142_v36 = vld [vmem:[%s4380_s4 + $0x50] sm:$0xff]  ;;  %v191_v37 = vld [vmem:[%s4399_s26 + $0x408] sm:$0xff] }
  0xcb   :  { %975 = vmatpush.msrb.mxu0 %v176_v38  ;;  %997 = vmatpush.msrb.mxu1 %v397_v39  ;;  %v412_v38 = vld [vmem:[%s4399_s26 + $0xaf0] sm:$0xff] }
  0xcc   :  { %1021 = vmatpush.msrb.mxu2 %v177_v40  ;;  %1043 = vmatpush.msrb.mxu3 %v398_v41  ;;  %v571_v39 = vpop.f32.mrf.mxu2  ;;  %v3408_v40 = vld [vmem:[%s4381_s3] sm:$0xff]  ;;  %v1158_v41 = vld [vmem:[%s4380_s4 + $0xd0] sm:$0xff] }
  0xcd   :  { %976 = vmatpush.msrb.mxu0 %v163_v42  ;;  %998 = vmatpush.msrb.mxu1 %v384_v43  ;;  %v525_v42 = vpop.f32.mrf.mxu0  ;;  %v178_v43 = vld [vmem:[%s4399_s26 + $0x3a0] sm:$0xff] }
  0xce   :  { %1022 = vmatpush.msrb.mxu2 %v164_v45  ;;  %1044 = vmatpush.msrb.mxu3 %v385_v46  ;;  %v399_v45 = vld [vmem:[%s4399_s26 + $0xa88] sm:$0xff]  ;;  %v1140_v46 = vld [vmem:[%s4380_s4 + $0x40] sm:$0xff] }
  0xcf   :  { %977 = vmatpush.msrb.mxu0 %v150_v47  ;;  %999 = vmatpush.msrb.mxu1 %v371_v48  ;;  %v1157_v47 = vld [vmem:[%s4380_s4 + $0xc8] sm:$0xff]  ;;  %v482_v48 = vperm.slane %v3408_v40, 0 }
  0xd0   :  { %1023 = vmatpush.msrb.mxu2 %v151_v50  ;;  %1045 = vmatpush.msrb.mxu3 %v372_v51  ;;  %v165_v50 = vld [vmem:[%s4399_s26 + $0x338] sm:$0xff]  ;;  %v386_v51 = vld [vmem:[%s4399_s26 + $0xa20] sm:$0xff] }
  0xd1   :  { %978 = vmatpush.msrb.mxu0 %v137_v52  ;;  %1000 = vmatpush.msrb.mxu1 %v358_v53  ;;  %v594_v52 = vpop.f32.mrf.mxu3  ;;  %v548_v53 = vpop.f32.mrf.mxu1 }
  0xd2   :  { %1024 = vmatpush.msrb.mxu2 %v138_v54  ;;  %1046 = vmatpush.msrb.mxu3 %v359_v55  ;;  %v1139_v54 = vld [vmem:[%s4380_s4 + $0x38] sm:$0xff]  ;;  %v1156_v55 = vld [vmem:[%s4380_s4 + $0xc0] sm:$0xff] }
  0xd3   :  { %979 = vmatpush.msrb.mxu0 %v124_v56  ;;  %1001 = vmatpush.msrb.mxu1 %v345_v57  ;;  %v483_v56 = vperm.slane %v3408_v40, 1  ;;  %v152_v57 = vld [vmem:[%s4399_s26 + $0x2d0] sm:$0xff] }
  0xd4   :  { %1025 = vmatpush.msrb.mxu2 %v125_v58  ;;  %1047 = vmatpush.msrb.mxu3 %v346_v59  ;;  %v373_v58 = vld [vmem:[%s4399_s26 + $0x9b8] sm:$0xff]  ;;  %v1138_v59 = vld [vmem:[%s4380_s4 + $0x30] sm:$0xff] }
  0xd5   :  { %980 = vmatpush.msrb.mxu0 %v111_v60  ;;  %1002 = vmatpush.msrb.mxu1 %v332_v61  ;;  %v1155_v60 = vld [vmem:[%s4380_s4 + $0xb8] sm:$0xff]  ;;  %v526_v61 = vadd.f32 %v525_v42, %v482_v48 }
  0xd6   :  { %1026 = vmatpush.msrb.mxu2 %v112_v63  ;;  %1048 = vmatpush.msrb.mxu3 %v333_v0  ;;  %v139_v63 = vld [vmem:[%s4399_s26 + $0x268] sm:$0xff]  ;;  %v360_v0 = vld [vmem:[%s4399_s26 + $0x950] sm:$0xff] }
  0xd7   :  { %981 = vmatpush.msrb.mxu0 %v98_v1  ;;  %1003 = vmatpush.msrb.mxu1 %v319_v2  ;;  %v572_v1 = vadd.f32 %v571_v39, %v483_v56  ;;  %v1137_v2 = vld [vmem:[%s4380_s4 + $0x28] sm:$0xff]  ;;  %v1148_v39 = vld [vmem:[%s4380_s4 + $0x80] sm:$0xff] }
  0xd8   :  { %1027 = vmatpush.msrb.mxu2 %v99_v4  ;;  %1049 = vmatpush.msrb.mxu3 %v320_v5  ;;  %v1154_v4 = vld [vmem:[%s4380_s4 + $0xb0] sm:$0xff]  ;;  %v126_v5 = vld [vmem:[%s4399_s26 + $0x200] sm:$0xff] }
  0xd9   :  { %982 = vmatpush.msrb.mxu0 %v85_v6  ;;  %1004 = vmatpush.msrb.mxu1 %v306_v7  ;;  %v347_v6 = vld [vmem:[%s4399_s26 + $0x8e8] sm:$0xff] }
  0xda   :  { %1028 = vmatpush.msrb.mxu2 %v86_v8  ;;  %1050 = vmatpush.msrb.mxu3 %v307_v9  ;;  %v1136_v9 = vld [vmem:[%s4380_s4 + $0x20] sm:$0xff] }
  0xdb   :  { %983 = vmatpush.msrb.mxu0 %v72_v10  ;;  %1005 = vmatpush.msrb.mxu1 %v293_v11  ;;  %v1153_v10 = vld [vmem:[%s4380_s4 + $0xa8] sm:$0xff]  ;;  %v549_v11 = vadd.f32 %v548_v53, %v526_v61 }
  0xdc   :  { %1029 = vmatpush.msrb.mxu2 %v73_v12  ;;  %1051 = vmatpush.msrb.mxu3 %v294_v13  ;;  %v113_v12 = vld [vmem:[%s4399_s26 + $0x198] sm:$0xff]  ;;  %v334_v13 = vld [vmem:[%s4399_s26 + $0x880] sm:$0xff]  ;;  %v1193_v53 = vld [vmem:[%s4380_s4 + $0x1e8] sm:$0xff] }
  0xdd   :  { %984 = vmatmul.f32.vlgmr.msrb.gmra.mxu0 %v3324_v18  ;;  %1030 = vmatmul.f32.vlgmr.msrb.gmra.mxu2 %v3324_v18  ;;  %1941 = vtanh.f32 %v549_v11  ;;  %v1190_v11 = vld [vmem:[%s4380_s4 + $0x1d0] sm:$0xff] }
  0xde   :  { %1060 = vmatpush.msra.mxu0 %v269_v14  ;;  %1343 = vmatpush.msra.mxu2 %v1147_v15  ;;  %v595_v14 = vadd.f32 %v594_v52, %v572_v1  ;;  %v1135_v15 = vld [vmem:[%s4380_s4 + $0x18] sm:$0xff]  ;;  %v1176_v52 = vld [vmem:[%s4380_s4 + $0x160] sm:$0xff] }
  0xdf   :  { %1006 = vmatpush.msrb.mxu1 %v280_v16  ;;  %1052 = vmatpush.msrb.mxu3 %v281_v17  ;;  %v1152_v16 = vld [vmem:[%s4380_s4 + $0xa0] sm:$0xff] }
  0xe0   :  { %1007 = vmatmul.f32.vlgmr.msrb.gmra.mxu1 %v3343_v22  ;;  %1053 = vmatmul.f32.vlgmr.msrb.gmra.mxu3 %v3343_v22  ;;  %v528_v7 = vpop.f32.mrf.mxu0  ;;  %1943 = vtanh.f32 %v595_v14  ;;  %v1172_v14 = vld [vmem:[%s4380_s4 + $0x140] sm:$0xff] }
  0xe1   :  { %1061 = vmatpush.msra.mxu0 %v256_v62  ;;  %1083 = vmatpush.msra.mxu1 %v477_v19  ;;  %v100_v62 = vld [vmem:[%s4399_s26 + $0x130] sm:$0xff]  ;;  %v321_v19 = vld [vmem:[%s4399_s26 + $0x818] sm:$0xff] }
  0xe2   :  { %1344 = vmatpush.msra.mxu2 %v1146_v20  ;;  %1366 = vmatpush.msra.mxu3 %v1163_v21  ;;  %v1134_v21 = vld [vmem:[%s4380_s4 + $0x10] sm:$0xff] }
  0xe3   :  { %1062 = vmatpush.msra.mxu0 %v243_v3  ;;  %1084 = vmatpush.msra.mxu1 %v464_v23  ;;  %v551_v17 = vpop.f32.mrf.mxu1  ;;  %v1151_v3 = vld [vmem:[%s4380_s4 + $0x98] sm:$0xff]  ;;  %v87_v23 = vld [vmem:[%s4399_s26 + $0xc8] sm:$0xff] }
  0xe4   :  { %1345 = vmatpush.msra.mxu2 %v1145_v24  ;;  %1367 = vmatpush.msra.mxu3 %v1162_v25  ;;  %v574_v8 = vpop.f32.mrf.mxu2  ;;  %v308_v24 = vld [vmem:[%s4399_s26 + $0x7b0] sm:$0xff]  ;;  %v1133_v25 = vld [vmem:[%s4380_s4 + $0x8] sm:$0xff] }
  0xe5   :  { %1063 = vmatpush.msra.mxu0 %v230_v26  ;;  %1085 = vmatpush.msra.mxu1 %v451_v27  ;;  %v1150_v26 = vld [vmem:[%s4380_s4 + $0x90] sm:$0xff]  ;;  %v529_v27 = vadd.f32 %v528_v7, %v482_v48  ;;  %v1177_v48 = vld [vmem:[%s4380_s4 + $0x168] sm:$0xff] }
  0xe6   :  { %1346 = vmatpush.msra.mxu2 %v1144_v28  ;;  %1368 = vmatpush.msra.mxu3 %v1161_v29  ;;  %v74_v28 = vld [vmem:[%s4399_s26 + $0x60] sm:$0xff]  ;;  %v295_v29 = vld [vmem:[%s4399_s26 + $0x748] sm:$0xff]  ;;  %v1206_v7 = vld [vmem:[%s4380_s4 + $0x250] sm:$0xff] }
  0xe7   :  { %987 = vmatmul.f32.gmra.mxu0 %v2630_v44  ;;  %1033 = vmatmul.f32.gmra.mxu2 %v2630_v44  ;;  %v1159_v44 = vld [vmem:[%s4380_s4 + $0xd8] sm:$0xff]  ;;  %v597_v20 = vpop.f32.mrf.mxu3 }
  0xe8   :  { %1064 = vmatpush.msra.mxu0 %v217_v30  ;;  %1086 = vmatpush.msra.mxu1 %v438_v31  ;;  %v575_v30 = vadd.f32 %v574_v8, %v483_v56  ;;  %v1132_v31 = vld [vmem:[%s4380_s4] sm:$0xff]  ;;  %v1225_v56 = vld [vmem:[%s4380_s4 + $0x2e8] sm:$0xff]  ;;  %v1223_v8 = vld [vmem:[%s4380_s4 + $0x2d8] sm:$0xff] }
  0xe9   :  { %1347 = vmatpush.msra.mxu2 %v1143_v32  ;;  %1369 = vmatpush.msra.mxu3 %v1160_v33  ;;  %v1149_v32 = vld [vmem:[%s4380_s4 + $0x88] sm:$0xff] }
  0xea   :  { %1010 = vmatmul.f32.gmra.mxu1 %v2648_v49  ;;  %1056 = vmatmul.f32.gmra.mxu3 %v2648_v49  ;;  %v1141_v49 = vld [vmem:[%s4380_s4 + $0x48] sm:$0xff]  ;;  %v3534_v33 = vpop.f32.mrf.mxu0 }
  0xeb   :  { %1065 = vmatpush.msra.mxu0 %v204_v34  ;;  %1087 = vmatpush.msra.mxu1 %v425_v35  ;;  %v1179_v35 = vld [vmem:[%s4380_s4 + $0x178] sm:$0xff] }
  0xec   :  { %1348 = vmatpush.msra.mxu2 %v1142_v36  ;;  %1370 = vmatpush.msra.mxu3 %v1159_v44  ;;  %v1211_v36 = vld [vmem:[%s4380_s4 + $0x278] sm:$0xff]  ;;  %v1942_v44 = vpop.eup %1941 }
  0xed   :  { %1066 = vmatpush.msra.mxu0 %v191_v37  ;;  %1088 = vmatpush.msra.mxu1 %v412_v38  ;;  %v552_v37 = vadd.f32 %v551_v17, %v529_v27  ;;  %v282_v38 = vld [vmem:[%s4399_s26 + $0x6e0] sm:$0xff]  ;;  %v3551_v42 = vpop.f32.mrf.mxu1 }
  0xee   :  { %1349 = vmatpush.msra.mxu2 %v1141_v49  ;;  %1371 = vmatpush.msra.mxu3 %v1158_v41  ;;  %v3536_v34 = vpop.f32.mrf.mxu2  ;;  %v1944_v49 = vpop.eup %1943  ;;  %v598_v41 = vadd.f32 %v597_v20, %v575_v30  ;;  %v1221_v20 = vld [vmem:[%s4380_s4 + $0x2c8] sm:$0xff]  ;;  %v1187_v30 = vld [vmem:[%s4380_s4 + $0x1b8] sm:$0xff] }
  0xef   :  { %1067 = vmatpush.msra.mxu0 %v178_v43  ;;  %1089 = vmatpush.msra.mxu1 %v399_v45  ;;  %v1178_v43 = vld [vmem:[%s4380_s4 + $0x170] sm:$0xff]  ;;  %v1195_v45 = vld [vmem:[%s4380_s4 + $0x1f8] sm:$0xff]  ;;  %1945 = vtanh.f32 %v552_v37 }
  0xf0   :  { %1350 = vmatpush.msra.mxu2 %v1140_v46  ;;  %1372 = vmatpush.msra.mxu3 %v1157_v47  ;;  %v1227_v47 = vld [vmem:[%s4380_s4 + $0x2f8] sm:$0xff]  ;;  %1947 = vtanh.f32 %v598_v41  ;;  %v1186_v37 = vld [vmem:[%s4380_s4 + $0x1b0] sm:$0xff] }
  0xf1   :  { %1068 = vmatpush.msra.mxu0 %v165_v50  ;;  %1090 = vmatpush.msra.mxu1 %v386_v51  ;;  %v3559_v46 = vpop.f32.mrf.mxu3  ;;  %v1194_v50 = vld [vmem:[%s4380_s4 + $0x1f0] sm:$0xff]  ;;  %v1209_v51 = vld [vmem:[%s4380_s4 + $0x268] sm:$0xff] }
  0xf2   :  { %1351 = vmatpush.msra.mxu2 %v1139_v54  ;;  %1373 = vmatpush.msra.mxu3 %v1156_v55  ;;  %v1208_v55 = vld [vmem:[%s4380_s4 + $0x260] sm:$0xff] }
  0xf3   :  { %1069 = vmatpush.msra.mxu0 %v152_v57  ;;  %1091 = vmatpush.msra.mxu1 %v373_v58  ;;  %v1175_v58 = vld [vmem:[%s4380_s4 + $0x158] sm:$0xff] }
  0xf4   :  { %1352 = vmatpush.msra.mxu2 %v1138_v59  ;;  %1374 = vmatpush.msra.mxu3 %v1155_v60  ;;  %v1192_v59 = vld [vmem:[%s4380_s4 + $0x1e0] sm:$0xff] }
  0xf5   :  { %1070 = vmatpush.msra.mxu0 %v139_v63  ;;  %1092 = vmatpush.msra.mxu1 %v360_v0  ;;  %v1946_v61 = vpop.eup %1945  ;;  %v1207_v63 = vld [vmem:[%s4380_s4 + $0x258] sm:$0xff]  ;;  %v1224_v0 = vld [vmem:[%s4380_s4 + $0x2e0] sm:$0xff] }
  0xf6   :  { %1353 = vmatpush.msra.mxu2 %v1137_v2  ;;  %1375 = vmatpush.msra.mxu3 %v1154_v4  ;;  %v1948_v1 = vpop.eup %1947  ;;  %v2011_v2 = vld [vmem:[%s4379_s1] sm:$0xff]  ;;  %v1174_v4 = vld [vmem:[%s4380_s4 + $0x150] sm:$0xff] }
  0xf7   :  { %1071 = vmatpush.msra.mxu0 %v126_v5  ;;  %1093 = vmatpush.msra.mxu1 %v347_v6  ;;  %v3586_v54 = vpop.f32.mrf.mxu0  ;;  %v1191_v5 = vld [vmem:[%s4380_s4 + $0x1d8] sm:$0xff] }
  0xf8   :  { %1354 = vmatpush.msra.mxu2 %v1136_v9  ;;  %1376 = vmatpush.msra.mxu3 %v1153_v10  ;;  %v3594_v57 = vpop.f32.mrf.mxu2  ;;  %v2012_v9 = vld [vmem:[%s4379_s1 + $0x8] sm:$0xff] }
  0xf9   :  { %1072 = vmatpush.msra.mxu0 %v113_v12  ;;  %1094 = vmatpush.msra.mxu1 %v334_v13  ;;  %v3602_v60 = vpop.f32.mrf.mxu1  ;;  %v1173_v10 = vld [vmem:[%s4380_s4 + $0x148] sm:$0xff]  ;;  %v1222_v13 = vld [vmem:[%s4380_s4 + $0x2d0] sm:$0xff] }
  0xfa   :  { %1355 = vmatpush.msra.mxu2 %v1135_v15  ;;  %1377 = vmatpush.msra.mxu3 %v1152_v16  ;;  %v1205_v12 = vld [vmem:[%s4380_s4 + $0x248] sm:$0xff]  ;;  %v486_v16 = vperm.slane %v3408_v40, 4 }
  0xfb   :  { %1073 = vmatpush.msra.mxu0 %v100_v62  ;;  %1095 = vmatpush.msra.mxu1 %v321_v19  ;;  %v3619_v6 = vpop.f32.mrf.mxu3  ;;  %v1189_v15 = vld [vmem:[%s4380_s4 + $0x1c8] sm:$0xff]  ;;  %v484_v62 = vperm.slane %v3408_v40, 2  ;;  %v1204_v19 = vld [vmem:[%s4380_s4 + $0x240] sm:$0xff] }
  0xfc   :  { %1356 = vmatpush.msra.mxu2 %v1134_v21  ;;  %1378 = vmatpush.msra.mxu3 %v1151_v3  ;;  %v485_v21 = vperm.slane %v3408_v40, 3  ;;  %v1171_v3 = vld [vmem:[%s4380_s4 + $0x138] sm:$0xff] }
  0xfd   :  { %1074 = vmatpush.msra.mxu0 %v87_v23  ;;  %1096 = vmatpush.msra.mxu1 %v308_v24  ;;  %v1188_v23 = vld [vmem:[%s4380_s4 + $0x1c0] sm:$0xff] }
  0xfe   :  { %1357 = vmatpush.msra.mxu2 %v1133_v25  ;;  %1379 = vmatpush.msra.mxu3 %v1150_v26  ;;  %v1203_v25 = vld [vmem:[%s4380_s4 + $0x238] sm:$0xff]  ;;  %v1220_v26 = vld [vmem:[%s4380_s4 + $0x2c0] sm:$0xff] }
  0xff   :  { %1075 = vmatpush.msra.mxu0 %v74_v28  ;;  %1097 = vmatpush.msra.mxu1 %v295_v29  ;;  %v487_v28 = vperm.slane %v3408_v40, 5  ;;  %v1170_v29 = vld [vmem:[%s4380_s4 + $0x130] sm:$0xff] }
 0x100   :  { %1358 = vmatpush.msra.mxu2 %v1132_v31  ;;  %1380 = vmatpush.msra.mxu3 %v1149_v32  ;;  %v618_v32 = vadd.f32 %v3534_v33, %v484_v62  ;;  %v1169_v33 = vld [vmem:[%s4380_s4 + $0x128] sm:$0xff] }
 0x101   :  { %1076 = vmatmul.f32.vlgmr.msra.gmra.mxu0 %v3324_v18  ;;  %1359 = vmatmul.f32.vlgmr.msra.gmra.mxu2 %v1942_v44  ;;  %v1210_v18 = vld [vmem:[%s4380_s4 + $0x270] sm:$0xff]  ;;  %v709_v17 = vpop.f32.mrf.mxu0  ;;  %v664_v44 = vadd.f32 %v3536_v34, %v485_v21 }
 0x102   :  { %1389 = vmatpush.msrb.mxu0 %v1179_v35  ;;  %1435 = vmatpush.msrb.mxu2 %v1211_v36  ;;  %v755_v24 = vpop.f32.mrf.mxu2  ;;  %v710_v31 = vadd.f32 %v709_v17, %v486_v16  ;;  %v1202_v35 = vld [vmem:[%s4380_s4 + $0x230] sm:$0xff]  ;;  %v1219_v36 = vld [vmem:[%s4380_s4 + $0x2b8] sm:$0xff] }
 0x103   :  { %1098 = vmatpush.msra.mxu1 %v282_v38  ;;  %1381 = vmatpush.msra.mxu3 %v1148_v39  ;;  %v732_v27 = vpop.f32.mrf.mxu1  ;;  %v1201_v39 = vld [vmem:[%s4380_s4 + $0x228] sm:$0xff]  ;;  %v1218_v34 = vld [vmem:[%s4380_s4 + $0x2b0] sm:$0xff] }
 0x104   :  { %1099 = vmatmul.f32.vlgmr.msra.gmra.mxu1 %v3343_v22  ;;  %1382 = vmatmul.f32.vlgmr.msra.gmra.mxu3 %v1944_v49  ;;  %v1226_v22 = vld [vmem:[%s4380_s4 + $0x2f0] sm:$0xff]  ;;  %v756_v49 = vadd.f32 %v755_v24, %v487_v28  ;;  %v733_v41 = vadd.f32 %v732_v27, %v710_v31  ;;  %v1241_v27 = vld [vmem:[%s4380_s4 + $0x368] sm:$0xff] }
 0x105   :  { %1390 = vmatpush.msrb.mxu0 %v1178_v43  ;;  %1412 = vmatpush.msrb.mxu1 %v1195_v45  ;;  %v778_v38 = vpop.f32.mrf.mxu3  ;;  %v1168_v43 = vld [vmem:[%s4380_s4 + $0x120] sm:$0xff]  ;;  %v1185_v45 = vld [vmem:[%s4380_s4 + $0x1a8] sm:$0xff] }
 0x106   :  { %1436 = vmatpush.msrb.mxu2 %v1210_v18  ;;  %1458 = vmatpush.msrb.mxu3 %v1227_v47  ;;  %v641_v18 = vadd.f32 %v3551_v42, %v618_v32  ;;  %v1200_v47 = vld [vmem:[%s4380_s4 + $0x220] sm:$0xff]  ;;  %1949 = vtanh.f32 %v733_v41 }
 0x107   :  { %1391 = vmatpush.msrb.mxu0 %v1177_v48  ;;  %1413 = vmatpush.msrb.mxu1 %v1194_v50  ;;  %v1217_v48 = vld [vmem:[%s4380_s4 + $0x2a8] sm:$0xff]  ;;  %v687_v50 = vadd.f32 %v3559_v46, %v664_v44  ;;  %v1184_v42 = vld [vmem:[%s4380_s4 + $0x1a0] sm:$0xff] }
 0x108   :  { %1437 = vmatpush.msrb.mxu2 %v1209_v51  ;;  %1459 = vmatpush.msrb.mxu3 %v1226_v22  ;;  %v1167_v51 = vld [vmem:[%s4380_s4 + $0x118] sm:$0xff]  ;;  %v1216_v46 = vld [vmem:[%s4380_s4 + $0x2a0] sm:$0xff]  ;;  %1951 = vtanh.f32 %v641_v18  ;;  %v1257_v44 = vld [vmem:[%s4380_s4 + $0x3e8] sm:$0xff] }
 0x109   :  { %1392 = vmatpush.msrb.mxu0 %v1176_v52  ;;  %1414 = vmatpush.msrb.mxu1 %v1193_v53  ;;  %v779_v52 = vadd.f32 %v778_v38, %v756_v49  ;;  %v1199_v53 = vld [vmem:[%s4380_s4 + $0x218] sm:$0xff]  ;;  %1953 = vtanh.f32 %v687_v50  ;;  %v1240_v32 = vld [vmem:[%s4380_s4 + $0x360] sm:$0xff]  ;;  %v1273_v49 = vld [vmem:[%s4380_s4 + $0x468] sm:$0xff] }
 0x10a   :  { %1438 = vmatpush.msrb.mxu2 %v1208_v55  ;;  %1460 = vmatpush.msrb.mxu3 %v1225_v56  ;;  %v621_v55 = vadd.f32 %v3586_v54, %v484_v62  ;;  %v1166_v56 = vld [vmem:[%s4380_s4 + $0x110] sm:$0xff]  ;;  %v1215_v54 = vld [vmem:[%s4380_s4 + $0x298] sm:$0xff] }
 0x10b   :  { %1079 = vmatmul.f32.gmra.mxu0 %v2011_v2  ;;  %1362 = vmatmul.f32.gmra.mxu2 %v1946_v61  ;;  %v712_v22 = vpop.f32.mrf.mxu0  ;;  %v1198_v61 = vld [vmem:[%s4380_s4 + $0x210] sm:$0xff]  ;;  %v1165_v2 = vld [vmem:[%s4380_s4 + $0x108] sm:$0xff]  ;;  %1955 = vtanh.f32 %v779_v52  ;;  %v1255_v18 = vld [vmem:[%s4380_s4 + $0x3d8] sm:$0xff] }
 0x10c   :  { %1393 = vmatpush.msrb.mxu0 %v1175_v58  ;;  %1415 = vmatpush.msrb.mxu1 %v1192_v59  ;;  %v1183_v58 = vld [vmem:[%s4380_s4 + $0x198] sm:$0xff]  ;;  %v758_v59 = vpop.f32.mrf.mxu2 }
 0x10d   :  { %1439 = vmatpush.msrb.mxu2 %v1207_v63  ;;  %1461 = vmatpush.msrb.mxu3 %v1224_v0  ;;  %v713_v63 = vadd.f32 %v712_v22, %v486_v16  ;;  %v735_v0 = vpop.f32.mrf.mxu1  ;;  %v488_v22 = vperm.slane %v3408_v40, 6  ;;  %v1271_v52 = vld [vmem:[%s4380_s4 + $0x458] sm:$0xff] }
 0x10e   :  { %1102 = vmatmul.f32.gmra.mxu1 %v2012_v9  ;;  %1385 = vmatmul.f32.gmra.mxu3 %v1948_v1  ;;  %v667_v1 = vadd.f32 %v3594_v57, %v485_v21  ;;  %v1214_v57 = vld [vmem:[%s4380_s4 + $0x290] sm:$0xff]  ;;  %v1164_v9 = vld [vmem:[%s4380_s4 + $0x100] sm:$0xff] }
 0x10f   :  { %1394 = vmatpush.msrb.mxu0 %v1174_v4  ;;  %1416 = vmatpush.msrb.mxu1 %v1191_v5  ;;  %v1182_v4 = vld [vmem:[%s4380_s4 + $0x190] sm:$0xff]  ;;  %v1197_v5 = vld [vmem:[%s4380_s4 + $0x208] sm:$0xff] }
 0x110   :  { %1440 = vmatpush.msrb.mxu2 %v1206_v7  ;;  %1462 = vmatpush.msrb.mxu3 %v1223_v8  ;;  %v759_v7 = vadd.f32 %v758_v59, %v487_v28  ;;  %v644_v8 = vadd.f32 %v3602_v60, %v621_v55  ;;  %v1213_v60 = vld [vmem:[%s4380_s4 + $0x288] sm:$0xff]  ;;  %v1291_v28 = vld [vmem:[%s4380_s4 + $0x4f8] sm:$0xff]  ;;  %v1270_v59 = vld [vmem:[%s4380_s4 + $0x450] sm:$0xff] }
 0x111   :  { %1395 = vmatpush.msrb.mxu0 %v1173_v10  ;;  %1417 = vmatpush.msrb.mxu1 %v1190_v11  ;;  %v1181_v10 = vld [vmem:[%s4380_s4 + $0x188] sm:$0xff]  ;;  %v781_v11 = vpop.f32.mrf.mxu3 }
 0x112   :  { %1441 = vmatpush.msrb.mxu2 %v1205_v12  ;;  %1463 = vmatpush.msrb.mxu3 %v1222_v13  ;;  %v736_v12 = vadd.f32 %v735_v0, %v713_v63  ;;  %v1196_v13 = vld [vmem:[%s4380_s4 + $0x200] sm:$0xff]  ;;  %v782_v62 = vadd.f32 %v781_v11, %v759_v7  ;;  %1957 = vtanh.f32 %v644_v8  ;;  %v1253_v55 = vld [vmem:[%s4380_s4 + $0x3c8] sm:$0xff]  ;;  %v1235_v63 = vld [vmem:[%s4380_s4 + $0x338] sm:$0xff] }
 0x113   :  { %1396 = vmatpush.msrb.mxu0 %v1172_v14  ;;  %1418 = vmatpush.msrb.mxu1 %v1189_v15  ;;  %v1950_v14 = vpop.eup %1949  ;;  %v690_v15 = vadd.f32 %v3619_v6, %v667_v1  ;;  %v1212_v6 = vld [vmem:[%s4380_s4 + $0x280] sm:$0xff]  ;;  %v1251_v7 = vld [vmem:[%s4380_s4 + $0x3b8] sm:$0xff] }
 0x114   :  { %1442 = vmatpush.msrb.mxu2 %v1204_v19  ;;  %1464 = vmatpush.msrb.mxu3 %v1221_v20  ;;  %v1952_v17 = vpop.eup %1951  ;;  %v1243_v19 = vld [vmem:[%s4380_s4 + $0x378] sm:$0xff]  ;;  %v1180_v20 = vld [vmem:[%s4380_s4 + $0x180] sm:$0xff]  ;;  %1959 = vtanh.f32 %v736_v12  ;;  %v1285_v12 = vld [vmem:[%s4380_s4 + $0x4c8] sm:$0xff] }
 0x115   :  { %1397 = vmatpush.msrb.mxu0 %v1171_v3  ;;  %1419 = vmatpush.msrb.mxu1 %v1188_v23  ;;  %v1954_v21 = vpop.eup %1953  ;;  %v1242_v23 = vld [vmem:[%s4380_s4 + $0x370] sm:$0xff]  ;;  %1961 = vtanh.f32 %v690_v15  ;;  %v1252_v0 = vld [vmem:[%s4380_s4 + $0x3c0] sm:$0xff]  ;;  %v1267_v15 = vld [vmem:[%s4380_s4 + $0x438] sm:$0xff] }
 0x116   :  { %1443 = vmatpush.msrb.mxu2 %v1203_v25  ;;  %1465 = vmatpush.msrb.mxu3 %v1220_v26  ;;  %v1956_v3 = vpop.eup %1955  ;;  %v1259_v25 = vld [vmem:[%s4380_s4 + $0x3f8] sm:$0xff]  ;;  %1963 = vtanh.f32 %v782_v62  ;;  %v1268_v11 = vld [vmem:[%s4380_s4 + $0x440] sm:$0xff] }
 0x117   :  { %1398 = vmatpush.msrb.mxu0 %v1170_v29  ;;  %1420 = vmatpush.msrb.mxu1 %v1187_v30  ;;  %v1275_v26 = vld [vmem:[%s4380_s4 + $0x478] sm:$0xff]  ;;  %v1258_v29 = vld [vmem:[%s4380_s4 + $0x3f0] sm:$0xff]  ;;  %v1232_v62 = vld [vmem:[%s4380_s4 + $0x320] sm:$0xff] }
 0x118   :  { %1444 = vmatpush.msrb.mxu2 %v1202_v35  ;;  %1466 = vmatpush.msrb.mxu3 %v1219_v36  ;;  %v1274_v30 = vld [vmem:[%s4380_s4 + $0x470] sm:$0xff]  ;;  %v1958_v36 = vpop.eup %1957 }
 0x119   :  { %1399 = vmatpush.msrb.mxu0 %v1169_v33  ;;  %1421 = vmatpush.msrb.mxu1 %v1186_v37  ;;  %v1290_v35 = vld [vmem:[%s4380_s4 + $0x4f0] sm:$0xff]  ;;  %v1239_v37 = vld [vmem:[%s4380_s4 + $0x358] sm:$0xff] }
 0x11a   :  { %1445 = vmatpush.msrb.mxu2 %v1201_v39  ;;  %1467 = vmatpush.msrb.mxu3 %v1218_v34  ;;  %v1960_v33 = vpop.eup %1959  ;;  %v1256_v34 = vld [vmem:[%s4380_s4 + $0x3e0] sm:$0xff] }
 0x11b   :  { %1400 = vmatpush.msrb.mxu0 %v1168_v43  ;;  %1422 = vmatpush.msrb.mxu1 %v1185_v45  ;;  %v1962_v39 = vpop.eup %1961  ;;  %v1238_v45 = vld [vmem:[%s4380_s4 + $0x350] sm:$0xff] }
 0x11c   :  { %1446 = vmatpush.msrb.mxu2 %v1200_v47  ;;  %1468 = vmatpush.msrb.mxu3 %v1217_v48  ;;  %v1964_v43 = vpop.eup %1963  ;;  %v1272_v47 = vld [vmem:[%s4380_s4 + $0x460] sm:$0xff]  ;;  %v1289_v48 = vld [vmem:[%s4380_s4 + $0x4e8] sm:$0xff] }
 0x11d   :  { %1401 = vmatpush.msrb.mxu0 %v1167_v51  ;;  %1423 = vmatpush.msrb.mxu1 %v1184_v42  ;;  %v1237_v51 = vld [vmem:[%s4380_s4 + $0x348] sm:$0xff]  ;;  %v1254_v42 = vld [vmem:[%s4380_s4 + $0x3d0] sm:$0xff] }
 0x11e   :  { %1447 = vmatpush.msrb.mxu2 %v1199_v53  ;;  %1469 = vmatpush.msrb.mxu3 %v1216_v46  ;;  %v1288_v53 = vld [vmem:[%s4380_s4 + $0x4e0] sm:$0xff] }
 0x11f   :  { %1402 = vmatpush.msrb.mxu0 %v1166_v56  ;;  %1424 = vmatpush.msrb.mxu1 %v1183_v58  ;;  %v1236_v46 = vld [vmem:[%s4380_s4 + $0x340] sm:$0xff]  ;;  %v489_v58 = vperm.slane %v3408_v40, 7 }
 0x120   :  { %1448 = vmatpush.msrb.mxu2 %v1198_v61  ;;  %1470 = vmatpush.msrb.mxu3 %v1215_v54  ;;  %v1287_v61 = vld [vmem:[%s4380_s4 + $0x4d8] sm:$0xff]  ;;  %v3877_v54 = vld [vmem:[%s4381_s3 + $0x8] sm:$0x1f] }
 0x121   :  { %1403 = vmatpush.msrb.mxu0 %v1165_v2  ;;  %1425 = vmatpush.msrb.mxu1 %v1182_v4  ;;  %v1269_v2 = vld [vmem:[%s4380_s4 + $0x448] sm:$0xff]  ;;  %v1286_v4 = vld [vmem:[%s4380_s4 + $0x4d0] sm:$0xff]  ;;  %v490_v8 = vperm.slane %v3877_v54, 0 }
 0x122   :  { %1449 = vmatpush.msrb.mxu2 %v1197_v5  ;;  %1471 = vmatpush.msrb.mxu3 %v1214_v57  ;;  %v3774_v16 = vpop.f32.mrf.mxu0  ;;  %v1234_v57 = vld [vmem:[%s4380_s4 + $0x330] sm:$0xff] }
 0x123   :  { %1404 = vmatpush.msrb.mxu0 %v1164_v9  ;;  %1426 = vmatpush.msrb.mxu1 %v1181_v10  ;;  %v802_v1 = vadd.f32 %v3774_v16, %v488_v22  ;;  %v1284_v16 = vld [vmem:[%s4380_s4 + $0x4c0] sm:$0xff] }
 0x124   :  { %1450 = vmatpush.msrb.mxu2 %v1196_v13  ;;  %1472 = vmatpush.msrb.mxu3 %v1213_v60  ;;  %v1233_v13 = vld [vmem:[%s4380_s4 + $0x328] sm:$0xff]  ;;  %v1250_v60 = vld [vmem:[%s4380_s4 + $0x3b0] sm:$0xff] }
 0x125   :  { %1405 = vmatmul.f32.vlgmr.msrb.gmra.mxu0 %v1952_v17  ;;  %1451 = vmatmul.f32.vlgmr.msrb.gmra.mxu2 %v1950_v14  ;;  %v3788_v24 = vpop.f32.mrf.mxu1 }
 0x126   :  { %1481 = vmatpush.msra.mxu0 %v1243_v19  ;;  %1427 = vmatpush.msrb.mxu1 %v1180_v20  ;;  %v3808_v31 = vpop.f32.mrf.mxu2  ;;  %v825_v14 = vadd.f32 %v3788_v24, %v802_v1  ;;  %v1249_v19 = vld [vmem:[%s4380_s4 + $0x3a8] sm:$0xff]  ;;  %v1231_v24 = vld [vmem:[%s4380_s4 + $0x318] sm:$0xff] }
 0x127   :  { %1473 = vmatpush.msrb.mxu3 %v1212_v6  ;;  %1428 = vmatmul.f32.vlgmr.msrb.gmra.mxu1 %v1954_v21  ;;  %v848_v10 = vadd.f32 %v3808_v31, %v489_v58  ;;  %v491_v21 = vperm.slane %v3877_v54, 1  ;;  %v1247_v31 = vld [vmem:[%s4380_s4 + $0x398] sm:$0xff] }
 0x128   :  { %1474 = vmatmul.f32.vlgmr.msrb.gmra.mxu3 %v1956_v3  ;;  %1482 = vmatpush.msra.mxu0 %v1242_v23  ;;  %v1266_v3 = vld [vmem:[%s4380_s4 + $0x430] sm:$0xff]  ;;  %v1283_v23 = vld [vmem:[%s4380_s4 + $0x4b8] sm:$0xff]  ;;  %1965 = vtanh.f32 %v825_v14  ;;  %v1321_v14 = vld [vmem:[%s4380_s4 + $0x5e8] sm:$0xff] }
 0x129   :  { %1504 = vmatpush.msra.mxu1 %v1259_v25  ;;  %1527 = vmatpush.msra.mxu2 %v1275_v26  ;;  %v3822_v38 = vpop.f32.mrf.mxu3  ;;  %v1248_v25 = vld [vmem:[%s4380_s4 + $0x3a0] sm:$0xff] }
 0x12a   :  { %1483 = vmatpush.msra.mxu0 %v1241_v27  ;;  %1550 = vmatpush.msra.mxu3 %v1291_v28  ;;  %v871_v6 = vadd.f32 %v3822_v38, %v848_v10  ;;  %v1265_v28 = vld [vmem:[%s4380_s4 + $0x428] sm:$0xff]  ;;  %v1276_v10 = vld [vmem:[%s4380_s4 + $0x480] sm:$0xff] }
 0x12b   :  { %1505 = vmatpush.msra.mxu1 %v1258_v29  ;;  %1528 = vmatpush.msra.mxu2 %v1274_v30  ;;  %v1282_v29 = vld [vmem:[%s4380_s4 + $0x4b0] sm:$0xff]  ;;  %v1229_v38 = vld [vmem:[%s4380_s4 + $0x308] sm:$0xff] }
 0x12c   :  { %1484 = vmatpush.msra.mxu0 %v1240_v32  ;;  %1551 = vmatpush.msra.mxu3 %v1290_v35  ;;  %v3830_v41 = vpop.f32.mrf.mxu0  ;;  %v1230_v30 = vld [vmem:[%s4380_s4 + $0x310] sm:$0xff]  ;;  %1967 = vtanh.f32 %v871_v6 }
 0x12d   :  { %1506 = vmatpush.msra.mxu1 %v1257_v44  ;;  %1408 = vmatmul.f32.gmra.mxu0 %v1958_v36  ;;  %v805_v27 = vadd.f32 %v3830_v41, %v488_v22  ;;  %v1264_v44 = vld [vmem:[%s4380_s4 + $0x420] sm:$0xff]  ;;  %v1318_v6 = vld [vmem:[%s4380_s4 + $0x5d0] sm:$0xff] }
 0x12e   :  { %1454 = vmatmul.f32.gmra.mxu2 %v1960_v33  ;;  %1485 = vmatpush.msra.mxu0 %v1239_v37  ;;  %v1281_v33 = vld [vmem:[%s4380_s4 + $0x4a8] sm:$0xff]  ;;  %v1280_v41 = vld [vmem:[%s4380_s4 + $0x4a0] sm:$0xff] }
 0x12f   :  { %1507 = vmatpush.msra.mxu1 %v1256_v34  ;;  %1529 = vmatpush.msra.mxu2 %v1273_v49  ;;  %v3844_v50 = vpop.f32.mrf.mxu1  ;;  %v1263_v49 = vld [vmem:[%s4380_s4 + $0x418] sm:$0xff]  ;;  %v1244_v22 = vld [vmem:[%s4380_s4 + $0x380] sm:$0xff] }
 0x130   :  { %1431 = vmatmul.f32.gmra.mxu1 %v1962_v39  ;;  %1477 = vmatmul.f32.gmra.mxu3 %v1964_v43  ;;  %v3865_v56 = vpop.f32.mrf.mxu2  ;;  %v1246_v39 = vld [vmem:[%s4380_s4 + $0x390] sm:$0xff]  ;;  %v828_v34 = vadd.f32 %v3844_v50, %v805_v27  ;;  %v1228_v43 = vld [vmem:[%s4380_s4 + $0x300] sm:$0xff] }
 0x131   :  { %1486 = vmatpush.msra.mxu0 %v1238_v45  ;;  %1508 = vmatpush.msra.mxu1 %v1255_v18  ;;  %v851_v36 = vadd.f32 %v3865_v56, %v489_v58  ;;  %v1245_v45 = vld [vmem:[%s4380_s4 + $0x388] sm:$0xff]  ;;  %v1307_v56 = vld [vmem:[%s4380_s4 + $0x578] sm:$0xff]  ;;  %v1278_v58 = vld [vmem:[%s4380_s4 + $0x490] sm:$0xff] }
 0x132   :  { %1530 = vmatpush.msra.mxu2 %v1272_v47  ;;  %1552 = vmatpush.msra.mxu3 %v1289_v48  ;;  %v1966_v48 = vpop.eup %1965  ;;  %v1298_v27 = vld [vmem:[%s4380_s4 + $0x530] sm:$0xff] }
 0x133   :  { %1487 = vmatpush.msra.mxu0 %v1237_v51  ;;  %1509 = vmatpush.msra.mxu1 %v1254_v42  ;;  %v3894_v5 = vpop.f32.mrf.mxu3  ;;  %v1262_v51 = vld [vmem:[%s4380_s4 + $0x410] sm:$0xff] }
 0x134   :  { %1531 = vmatpush.msra.mxu2 %v1271_v52  ;;  %1553 = vmatpush.msra.mxu3 %v1288_v53  ;;  %v874_v50 = vadd.f32 %v3894_v5, %v851_v36  ;;  %v1279_v52 = vld [vmem:[%s4380_s4 + $0x498] sm:$0xff]  ;;  %v1968_v53 = vpop.eup %1967 }
 0x135   :  { %1488 = vmatpush.msra.mxu0 %v1236_v46  ;;  %1510 = vmatpush.msra.mxu1 %v1253_v55  ;;  %v1261_v46 = vld [vmem:[%s4380_s4 + $0x408] sm:$0xff] }
 0x136   :  { %1532 = vmatpush.msra.mxu2 %v1270_v59  ;;  %1554 = vmatpush.msra.mxu3 %v1287_v61  ;;  %v893_v9 = vpop.f32.mrf.mxu0  ;;  %v1260_v61 = vld [vmem:[%s4380_s4 + $0x400] sm:$0xff] }
 0x137   :  { %1489 = vmatpush.msra.mxu0 %v1235_v63  ;;  %1511 = vmatpush.msra.mxu1 %v1252_v0  ;;  %v894_v20 = vadd.f32 %v893_v9, %v490_v8  ;;  %v1323_v0 = vld [vmem:[%s4380_s4 + $0x5f8] sm:$0xff] }
 0x138   :  { %1533 = vmatpush.msra.mxu2 %v1269_v2  ;;  %1555 = vmatpush.msra.mxu3 %v1286_v4  ;;  %v1306_v2 = vld [vmem:[%s4380_s4 + $0x570] sm:$0xff]  ;;  %v1277_v4 = vld [vmem:[%s4380_s4 + $0x488] sm:$0xff] }
 0x139   :  { %1490 = vmatpush.msra.mxu0 %v1234_v57  ;;  %1512 = vmatpush.msra.mxu1 %v1251_v7  ;;  %v916_v17 = vpop.f32.mrf.mxu1  ;;  %v1322_v57 = vld [vmem:[%s4380_s4 + $0x5f0] sm:$0xff] }
 0x13a   :  { %1534 = vmatpush.msra.mxu2 %v1268_v11  ;;  %1556 = vmatpush.msra.mxu3 %v1285_v12  ;;  %v917_v32 = vadd.f32 %v916_v17, %v894_v20  ;;  %v1304_v12 = vld [vmem:[%s4380_s4 + $0x560] sm:$0xff] }
 0x13b   :  { %1491 = vmatpush.msra.mxu0 %v1233_v13  ;;  %1513 = vmatpush.msra.mxu1 %v1250_v60  ;;  %v1303_v60 = vld [vmem:[%s4380_s4 + $0x558] sm:$0xff]  ;;  %v1320_v17 = vld [vmem:[%s4380_s4 + $0x5e0] sm:$0xff] }
 0x13c   :  { %1535 = vmatpush.msra.mxu2 %v1267_v15  ;;  %1557 = vmatpush.msra.mxu3 %v1284_v16  ;;  %v939_v26 = vpop.f32.mrf.mxu2  ;;  %1969 = vtanh.f32 %v917_v32  ;;  %v1302_v16 = vld [vmem:[%s4380_s4 + $0x550] sm:$0xff]  ;;  %v1315_v32 = vld [vmem:[%s4380_s4 + $0x5b8] sm:$0xff] }
 0x13d   :  { %1492 = vmatpush.msra.mxu0 %v1232_v62  ;;  %1514 = vmatpush.msra.mxu1 %v1249_v19  ;;  %v940_v35 = vadd.f32 %v939_v26, %v491_v21  ;;  %1971 = vtanh.f32 %v828_v34  ;;  %v1301_v62 = vld [vmem:[%s4380_s4 + $0x548] sm:$0xff]  ;;  %v1319_v19 = vld [vmem:[%s4380_s4 + $0x5d8] sm:$0xff]  ;;  %v1330_v26 = vld [vmem:[%s4380_s4 + $0x630] sm:$0xff] }
 0x13e   :  { %1536 = vmatpush.msra.mxu2 %v1266_v3  ;;  %1558 = vmatpush.msra.mxu3 %v1283_v23  ;;  %v1299_v3 = vld [vmem:[%s4380_s4 + $0x538] sm:$0xff]  ;;  %v1317_v23 = vld [vmem:[%s4380_s4 + $0x5c8] sm:$0xff] }
 0x13f   :  { %1493 = vmatpush.msra.mxu0 %v1231_v24  ;;  %1515 = vmatpush.msra.mxu1 %v1248_v25  ;;  %v962_v37 = vpop.f32.mrf.mxu3  ;;  %v492_v24 = vperm.slane %v3877_v54, 2  ;;  %v1331_v25 = vld [vmem:[%s4380_s4 + $0x638] sm:$0xff] }
 0x140   :  { %1537 = vmatpush.msra.mxu2 %v1265_v28  ;;  %1559 = vmatpush.msra.mxu3 %v1282_v29  ;;  %v896_v40 = vpop.f32.mrf.mxu0  ;;  %v963_v47 = vadd.f32 %v962_v37, %v940_v35  ;;  %v1316_v28 = vld [vmem:[%s4380_s4 + $0x5c0] sm:$0xff] }
 0x141   :  { %1494 = vmatpush.msra.mxu0 %v1230_v30  ;;  %1516 = vmatpush.msra.mxu1 %v1247_v31  ;;  %v897_v18 = vadd.f32 %v896_v40, %v490_v8  ;;  %v1305_v8 = vld [vmem:[%s4380_s4 + $0x568] sm:$0xff]  ;;  %v1296_v35 = vld [vmem:[%s4380_s4 + $0x520] sm:$0xff] }
 0x142   :  { %1538 = vmatpush.msra.mxu2 %v1264_v44  ;;  %1560 = vmatpush.msra.mxu3 %v1281_v33  ;;  %1973 = vtanh.f32 %v963_v47  ;;  %v1970_v1 = vpop.eup %1969  ;;  %v1297_v30 = vld [vmem:[%s4380_s4 + $0x528] sm:$0xff]  ;;  %v1314_v44 = vld [vmem:[%s4380_s4 + $0x5b0] sm:$0xff]  ;;  %v493_v33 = vperm.slane %v3877_v54, 3  ;;  %v1311_v47 = vld [vmem:[%s4380_s4 + $0x598] sm:$0xff] }
 0x143   :  { %1495 = vmatpush.msra.mxu0 %v1229_v38  ;;  %1517 = vmatpush.msra.mxu1 %v1246_v39  ;;  %v919_v42 = vpop.f32.mrf.mxu1  ;;  %1975 = vtanh.f32 %v874_v50  ;;  %v1972_v9 = vpop.eup %1971  ;;  %v1295_v38 = vld [vmem:[%s4380_s4 + $0x518] sm:$0xff]  ;;  %v1313_v39 = vld [vmem:[%s4380_s4 + $0x5a8] sm:$0xff] }
 0x144   :  { %1539 = vmatpush.msra.mxu2 %v1263_v49  ;;  %1561 = vmatpush.msra.mxu3 %v1280_v41  ;;  %v920_v55 = vadd.f32 %v919_v42, %v897_v18  ;;  %v1329_v40 = vld [vmem:[%s4380_s4 + $0x628] sm:$0xff]  ;;  %v1294_v49 = vld [vmem:[%s4380_s4 + $0x510] sm:$0xff]  ;;  %v1328_v42 = vld [vmem:[%s4380_s4 + $0x620] sm:$0xff] }
 0x145   :  { %1496 = vmatpush.msra.mxu0 %v1228_v43  ;;  %1518 = vmatpush.msra.mxu1 %v1245_v45  ;;  %v1312_v43 = vld [vmem:[%s4380_s4 + $0x5a0] sm:$0xff]  ;;  %v1293_v45 = vld [vmem:[%s4380_s4 + $0x508] sm:$0xff] }
 0x146   :  { %1497 = vmatmul.f32.vlgmr.msra.gmra.mxu0 %v1966_v48  ;;  %1540 = vmatpush.msra.mxu2 %v1262_v51  ;;  %v942_v59 = vpop.f32.mrf.mxu2  ;;  %1977 = vtanh.f32 %v920_v55  ;;  %v1292_v51 = vld [vmem:[%s4380_s4 + $0x500] sm:$0xff]  ;;  %v1326_v55 = vld [vmem:[%s4380_s4 + $0x610] sm:$0xff] }
 0x147   :  { %1519 = vmatpush.msra.mxu1 %v1244_v22  ;;  %1562 = vmatpush.msra.mxu3 %v1279_v52  ;;  %v943_v63 = vadd.f32 %v942_v59, %v491_v21  ;;  %v1300_v21 = vld [vmem:[%s4380_s4 + $0x540] sm:$0xff]  ;;  %v1327_v22 = vld [vmem:[%s4380_s4 + $0x618] sm:$0xff] }
 0x148   :  { %1520 = vmatmul.f32.vlgmr.msra.gmra.mxu1 %v1968_v53  ;;  %1541 = vmatpush.msra.mxu2 %v1261_v46  ;;  %v1974_v11 = vpop.eup %1973  ;;  %v1310_v53 = vld [vmem:[%s4380_s4 + $0x590] sm:$0xff] }
 0x149   :  { %1573 = vmatpush.msrb.mxu0 %v1307_v56  ;;  %1563 = vmatpush.msra.mxu3 %v1278_v58  ;;  %v965_v5 = vpop.f32.mrf.mxu3  ;;  %v1976_v13 = vpop.eup %1975  ;;  %v1309_v58 = vld [vmem:[%s4380_s4 + $0x588] sm:$0xff] }
 0x14a   :  { %1542 = vmatpush.msra.mxu2 %v1260_v61  ;;  %v966_v7 = vadd.f32 %v965_v5, %v943_v63  ;;  %1596 = vmatpush.msrb.mxu1 %v1323_v0  ;;  %v1308_v61 = vld [vmem:[%s4380_s4 + $0x580] sm:$0xff]  ;;  %v1325_v63 = vld [vmem:[%s4380_s4 + $0x608] sm:$0xff] }
 0x14b   :  { %1543 = vmatmul.f32.vlgmr.msra.gmra.mxu2 %v1970_v1  ;;  %1574 = vmatpush.msrb.mxu0 %v1306_v2 }
 0x14c   :  { %1564 = vmatpush.msra.mxu3 %v1277_v4  ;;  %1597 = vmatpush.msrb.mxu1 %v1322_v57  ;;  %1979 = vtanh.f32 %v966_v7  ;;  %v1978_v15 = vpop.eup %1977  ;;  %v1324_v57 = vld [vmem:[%s4380_s4 + $0x600] sm:$0xff] }
 0x14d   :  { %1575 = vmatpush.msrb.mxu0 %v1305_v8  ;;  %1627 = vmatpush.msrb.mxu2 %v1331_v25  ;;  %v1652_v25 = vld [vmem:[%s4384_s6 + $0x40] sm:$0xff] }
 0x14e   :  { %1500 = vmatmul.f32.gmra.mxu0 %v1972_v9  ;;  %1565 = vmatpush.msra.mxu3 %v1276_v10  ;;  %v494_v9 = vperm.slane %v3877_v54, 4  ;;  %v1658_v54 = vld [vmem:[%s4384_s6 + $0x70] sm:$0xff] }
 0x14f   :  { %1566 = vmatmul.f32.vlgmr.msra.gmra.mxu3 %v1974_v11  ;;  %1576 = vmatpush.msrb.mxu0 %v1304_v12 }
 0x150   :  { %1523 = vmatmul.f32.gmra.mxu1 %v1976_v13  ;;  %1628 = vmatpush.msrb.mxu2 %v1330_v26 }
 0x151   :  { %1577 = vmatpush.msrb.mxu0 %v1303_v60  ;;  %1598 = vmatpush.msrb.mxu1 %v1321_v14 }
 0x152   :  { %v1980_v20 = vpop.eup %1979  ;;  %1629 = vmatpush.msrb.mxu2 %v1329_v40  ;;  %v1647_v40 = vld [vmem:[%s4384_s6 + $0x18] sm:$0xff] }
 0x153   :  { %1546 = vmatmul.f32.gmra.mxu2 %v1978_v15  ;;  %1578 = vmatpush.msrb.mxu0 %v1302_v16 }
 0x154   :  { %1599 = vmatpush.msrb.mxu1 %v1320_v17  ;;  %1630 = vmatpush.msrb.mxu2 %v1328_v42 }
 0x155   :  { %1579 = vmatpush.msrb.mxu0 %v1301_v62 }
 0x156   :  { %1600 = vmatpush.msrb.mxu1 %v1319_v19  ;;  %1631 = vmatpush.msrb.mxu2 %v1327_v22  ;;  %v1659_v19 = vld [vmem:[%s4384_s6 + $0x78] sm:$0xff]  ;;  %v1644_v22 = vld [vmem:[%s4384_s6] sm:$0xff] }
 0x157   :  { %1569 = vmatmul.f32.gmra.mxu3 %v1980_v20  ;;  %1580 = vmatpush.msrb.mxu0 %v1300_v21  ;;  %v1657_v20 = vld [vmem:[%s4384_s6 + $0x68] sm:$0xff] }
 0x158   :  { %1601 = vmatpush.msrb.mxu1 %v1318_v6  ;;  %1632 = vmatpush.msrb.mxu2 %v1326_v55  ;;  %v1656_v6 = vld [vmem:[%s4384_s6 + $0x60] sm:$0xff] }
 0x159   :  { %1581 = vmatpush.msrb.mxu0 %v1299_v3  ;;  %1664 = vmatpush.msrb.mxu3 %v1659_v19  ;;  %v1655_v3 = vld [vmem:[%s4384_s6 + $0x58] sm:$0xff] }
 0x15a   :  { %1602 = vmatpush.msrb.mxu1 %v1317_v23  ;;  %v985_v29 = vpop.f32.mrf.mxu0  ;;  %1633 = vmatpush.msrb.mxu2 %v1325_v63  ;;  %v1654_v23 = vld [vmem:[%s4384_s6 + $0x50] sm:$0xff]  ;;  %v1704_v63 = vld [vmem:[%s4385_s8 + $0x78] sm:$0xff] }
 0x15b   :  { %1582 = vmatpush.msrb.mxu0 %v1298_v27  ;;  %v986_v31 = vadd.f32 %v985_v29, %v492_v24  ;;  %1665 = vmatpush.msrb.mxu3 %v1658_v54  ;;  %v1697_v54 = vld [vmem:[%s4385_s8 + $0x40] sm:$0xff] }
 0x15c   :  { %1603 = vmatpush.msrb.mxu1 %v1316_v28  ;;  %1634 = vmatpush.msrb.mxu2 %v1324_v57  ;;  %v1651_v28 = vld [vmem:[%s4384_s6 + $0x38] sm:$0xff] }
 0x15d   :  { %1583 = vmatpush.msrb.mxu0 %v1297_v30  ;;  %v1008_v36 = vpop.f32.mrf.mxu1  ;;  %1666 = vmatpush.msrb.mxu3 %v1657_v20  ;;  %v1650_v30 = vld [vmem:[%s4384_s6 + $0x30] sm:$0xff] }
 0x15e   :  { %v1009_v37 = vadd.f32 %v1008_v36, %v986_v31  ;;  %1604 = vmatpush.msrb.mxu1 %v1315_v32  ;;  %v1649_v32 = vld [vmem:[%s4384_s6 + $0x28] sm:$0xff]  ;;  %v1935_v36 = vld [vmem:[%s4382_s5] ss:$0 sm:$0xff]  ;;  %1709 = vmatpush.msra.mxu2 %v1704_v63 }
 0x15f   :  { %1584 = vmatpush.msrb.mxu0 %v1296_v35  ;;  %1667 = vmatpush.msrb.mxu3 %v1656_v6 }
 0x160   :  { %1981 = vtanh.f32 %v1009_v37  ;;  %1605 = vmatpush.msrb.mxu1 %v1314_v44  ;;  %v1031_v34 = vpop.f32.mrf.mxu2 }
 0x161   :  { %1585 = vmatpush.msrb.mxu0 %v1295_v38  ;;  %v1032_v41 = vadd.f32 %v1031_v34, %v493_v33  ;;  %1668 = vmatpush.msrb.mxu3 %v1655_v3  ;;  %v1696_v3 = vld [vmem:[%s4385_s8 + $0x38] sm:$0xff] }
 0x162   :  { %1606 = vmatpush.msrb.mxu1 %v1313_v39  ;;  %v1648_v39 = vld [vmem:[%s4384_s6 + $0x20] sm:$0xff] }
 0x163   :  { %1586 = vmatpush.msrb.mxu0 %v1294_v49  ;;  %v1054_v18 = vpop.f32.mrf.mxu3  ;;  %1669 = vmatpush.msrb.mxu3 %v1654_v23  ;;  %v1646_v49 = vld [vmem:[%s4384_s6 + $0x10] sm:$0xff] }
 0x164   :  { %v988_v48 = vpop.f32.mrf.mxu0  ;;  %v1055_v50 = vadd.f32 %v1054_v18, %v1032_v41  ;;  %1607 = vmatpush.msrb.mxu1 %v1312_v43  ;;  %v1645_v18 = vld [vmem:[%s4384_s6 + $0x8] sm:$0xff] }
 0x165   :  { %v989_v52 = vadd.f32 %v988_v48, %v492_v24  ;;  %1587 = vmatpush.msrb.mxu0 %v1293_v45  ;;  %v1653_v24 = vld [vmem:[%s4384_s6 + $0x48] sm:$0xff] }
 0x166   :  { %v1982_v46 = vpop.eup %1981  ;;  %1983 = vtanh.f32 %v1055_v50  ;;  %1608 = vmatpush.msrb.mxu1 %v1311_v47  ;;  %1670 = vmatpush.msrb.mxu3 %v1653_v24 }
 0x167   :  { %v1011_v56 = vpop.f32.mrf.mxu1  ;;  %1588 = vmatpush.msrb.mxu0 %v1292_v51 }
 0x168   :  { %v1012_v59 = vadd.f32 %v1011_v56, %v989_v52  ;;  %1589 = vmatmul.f32.vlgmr.msrb.gmra.mxu0 %v1982_v46  ;;  %1609 = vmatpush.msrb.mxu1 %v1310_v53 }
 0x169   :  { %1671 = vmatpush.msrb.mxu3 %v1652_v25  ;;  %v1695_v25 = vld [vmem:[%s4385_s8 + $0x30] sm:$0xff] }
 0x16a   :  { %1985 = vtanh.f32 %v1012_v59  ;;  %v1034_v0 = vpop.f32.mrf.mxu2  ;;  %1610 = vmatpush.msrb.mxu1 %v1309_v58 }
 0x16b   :  { %v1035_v1 = vadd.f32 %v1034_v0, %v493_v33  ;;  %1672 = vmatpush.msrb.mxu3 %v1651_v28  ;;  %v1703_v0 = vld [vmem:[%s4385_s8 + $0x70] sm:$0xff]  ;;  %v1694_v28 = vld [vmem:[%s4385_s8 + $0x28] sm:$0xff] }
 0x16c   :  { %v1984_v2 = vpop.eup %1983  ;;  %1611 = vmatpush.msrb.mxu1 %v1308_v61  ;;  %1710 = vmatpush.msra.mxu2 %v1703_v0 }
 0x16d   :  { %v1057_v4 = vpop.f32.mrf.mxu3  ;;  %1612 = vmatmul.f32.vlgmr.msrb.gmra.mxu1 %v1984_v2  ;;  %1673 = vmatpush.msrb.mxu3 %v1650_v30  ;;  %v1702_v2 = vld [vmem:[%s4385_s8 + $0x68] sm:$0xff]  ;;  %v1693_v30 = vld [vmem:[%s4385_s8 + $0x20] sm:$0xff] }
 0x16e   :  { %v1058_v5 = vadd.f32 %v1057_v4, %v1035_v1  ;;  %1711 = vmatpush.msra.mxu2 %v1702_v2 }
 0x16f   :  { %1674 = vmatpush.msrb.mxu3 %v1649_v32 }
 0x170   :  { %v1986_v7 = vpop.eup %1985  ;;  %1987 = vtanh.f32 %v1058_v5 }
 0x171   :  { %1592 = vmatmul.f32.gmra.mxu0 %v1986_v7  ;;  %1675 = vmatpush.msrb.mxu3 %v1648_v39  ;;  %v1689_v39 = vld [vmem:[%s4385_s8] sm:$0xff] }
 0x173   :  { %1676 = vmatpush.msrb.mxu3 %v1647_v40  ;;  %v1936_v40 = vld [vmem:[%s4383_s7] ss:$0 sm:$0xff] }
 0x175   :  { %1677 = vmatpush.msrb.mxu3 %v1646_v49 }
 0x176   :  { %v1988_v8 = vpop.eup %1987 }
 0x177   :  { %1615 = vmatmul.f32.gmra.mxu1 %v1988_v8  ;;  %1678 = vmatpush.msrb.mxu3 %v1645_v18  ;;  %v1701_v8 = vld [vmem:[%s4385_s8 + $0x60] sm:$0xff] }
 0x178   :  { %1712 = vmatpush.msra.mxu2 %v1701_v8  ;;  %v1836_v8 = vld [vmem:[%s4389_s13 + $0x70] sm:$0xff] }
 0x179   :  { %1679 = vmatpush.msrb.mxu3 %v1644_v22 }
 0x17e   :  { %v1077_v10 = vpop.f32.mrf.mxu0 }
 0x17f   :  { %v1078_v11 = vadd.f32 %v1077_v10, %v494_v9 }
 0x181   :  { %v1100_v12 = vpop.f32.mrf.mxu1 }
 0x182   :  { %v1101_v13 = vadd.f32 %v1100_v12, %v1078_v11  ;;  %v1700_v11 = vld [vmem:[%s4385_s8 + $0x58] sm:$0xff] }
 0x183   :  { %1713 = vmatpush.msra.mxu2 %v1700_v11  ;;  %v1833_v11 = vld [vmem:[%s4389_s13 + $0x58] sm:$0xff] }
 0x184   :  { %1989 = vtanh.f32 %v1101_v13  ;;  %v1360_v21 = vpop.f32.mrf.mxu2 }
 0x185   :  { %v1361_v37 = vadd.f32 %v1935_v36, %v1360_v21 }
 0x187   :  { %v1383_v26 = vpop.f32.mrf.mxu3 }
 0x188   :  { %v1080_v60 = vpop.f32.mrf.mxu0  ;;  %v1384_v34 = vadd.f32 %v1383_v26, %v1361_v37  ;;  %v1691_v37 = vld [vmem:[%s4385_s8 + $0x10] sm:$0xff] }
 0x189   :  { %v1081_v14 = vadd.f32 %v1080_v60, %v494_v9 }
 0x18a   :  { %v1990_v15 = vpop.eup %1989 }
 0x18b   :  { %v1103_v16 = vpop.f32.mrf.mxu1  ;;  %1928 = vmatmul.msk.f32.vlgmr.msrb.gmra.mxu2 %vm1336_vm0, %v1990_v15 }
 0x18c   :  { %v1104_v17 = vadd.f32 %v1103_v16, %v1081_v14  ;;  %v1699_v14 = vld [vmem:[%s4385_s8 + $0x50] sm:$0xff] }
 0x18d   :  { %1714 = vmatpush.msra.mxu2 %v1699_v14  ;;  %v1830_v14 = vld [vmem:[%s4389_s13 + $0x40] sm:$0xff] }
 0x18e   :  { %1991 = vtanh.f32 %v1104_v17  ;;  %v1363_v27 = vpop.f32.mrf.mxu2  ;;  %v1698_v17 = vld [vmem:[%s4385_s8 + $0x48] sm:$0xff] }
 0x18f   :  { %v1364_v50 = vadd.f32 %v1935_v36, %v1363_v27  ;;  %1715 = vmatpush.msra.mxu2 %v1698_v17  ;;  %v1692_v36 = vld [vmem:[%s4385_s8 + $0x18] sm:$0xff] }
 0x191   :  { %v1386_v44 = vpop.f32.mrf.mxu3  ;;  %1716 = vmatpush.msra.mxu2 %v1697_v54 }
 0x192   :  { %v1387_v53 = vadd.f32 %v1386_v44, %v1364_v50 }
 0x193   :  { %1717 = vmatpush.msra.mxu2 %v1696_v3  ;;  %v1829_v3 = vld [vmem:[%s4389_s13 + $0x38] sm:$0xff] }
 0x194   :  { %v1992_v62 = vpop.eup %1991 }
 0x195   :  { %1929 = vmatmul.msk.f32.gmra.mxu2 %vm1336_vm0, %v1992_v62 }
 0x196   :  { %1718 = vmatpush.msra.mxu2 %v1695_v25  ;;  %v1826_v25 = vld [vmem:[%s4389_s13 + $0x20] sm:$0xff] }
 0x198   :  { %1719 = vmatpush.msra.mxu2 %v1694_v28  ;;  %v1823_v28 = vld [vmem:[%s4389_s13 + $0x8] sm:$0xff] }
 0x19a   :  { %1720 = vmatpush.msra.mxu2 %v1693_v30  ;;  %v1878_v30 = vld [vmem:[%s4392_s15 + $0x78] sm:$0xff] }
 0x19b   :  { %1883 = vmatpush.msra.mxu0 %v1878_v30 }
 0x19c   :  { %1721 = vmatpush.msra.mxu2 %v1692_v36  ;;  %v1874_v36 = vld [vmem:[%s4392_s15 + $0x58] sm:$0xff] }
 0x19e   :  { %1722 = vmatpush.msra.mxu2 %v1691_v37  ;;  %v1871_v37 = vld [vmem:[%s4392_s15 + $0x40] sm:$0xff] }
 0x1a2   :  { %v1406_v29 = vpop.f32.mrf.mxu0 }
 0x1a3   :  { %v1407_v45 = vadd.f32 %v1406_v29, %v1384_v34 }
 0x1a4   :  { %v1429_v31 = vpop.f32.mrf.mxu1 }
 0x1a5   :  { %v1430_v51 = vadd.f32 %v1429_v31, %v1407_v45 }
 0x1a8   :  { %v1452_v35 = vpop.f32.mrf.mxu2 }
 0x1a9   :  { %v1453_v42 = vadd.f32 %v1452_v35, %v1430_v51 }
 0x1aa   :  { %v1409_v33 = vpop.f32.mrf.mxu0 }
 0x1ab   :  { %v1475_v41 = vpop.f32.mrf.mxu3  ;;  %v1410_v55 = vadd.f32 %v1409_v33, %v1387_v53  ;;  %v1762_v53 = vld [vmem:[%s4387_s11 + $0x8] sm:$0x3] }
 0x1ac   :  { %v1476_v56 = vadd.f32 %v1475_v41, %v1453_v42  ;;  %1930 = vmatpush.msk.msra.mxu1 %vm1766_vm2, %v1762_v53 }
 0x1ad   :  { %v1432_v38 = vpop.f32.mrf.mxu1 }
 0x1ae   :  { %v1433_v1 = vadd.f32 %v1432_v38, %v1410_v55  ;;  %v1690_v38 = vld [vmem:[%s4385_s8 + $0x8] sm:$0xff] }
 0x1af   :  { %1723 = vmatpush.msra.mxu2 %v1690_v38  ;;  %v1870_v38 = vld [vmem:[%s4392_s15 + $0x38] sm:$0xff] }
 0x1b1   :  { %v1455_v43 = vpop.f32.mrf.mxu2  ;;  %1724 = vmatpush.msra.mxu2 %v1689_v39  ;;  %v1869_v39 = vld [vmem:[%s4392_s15 + $0x30] sm:$0xff] }
 0x1b2   :  { %v1456_v4 = vadd.f32 %v1455_v43, %v1433_v1 }
 0x1b3   :  { %v1478_v46 = vpop.f32.mrf.mxu3 }
 0x1b4   :  { %v1479_v12 = vadd.f32 %v1478_v46, %v1456_v4  ;;  %v1761_v4 = vld [vmem:[%s4387_s11] sm:$0xff] }
 0x1b5   :  { %1785 = vmatpush.msra.mxu1 %v1761_v4 }
 0x1c3   :  { %v1498_v47 = vpop.f32.mrf.mxu0 }
 0x1c4   :  { %v1499_v59 = vadd.f32 %v1498_v47, %v1476_v56 }
 0x1c5   :  { %v1521_v48 = vpop.f32.mrf.mxu1 }
 0x1c6   :  { %v1522_v5 = vadd.f32 %v1521_v48, %v1499_v59  ;;  %v1937_v48 = vld [vmem:[%s4386_s9] ss:$0 sm:$0xff] }
 0x1cb   :  { %v1501_v58 = vpop.f32.mrf.mxu0 }
 0x1cc   :  { %v1502_v15 = vadd.f32 %v1501_v58, %v1479_v12  ;;  %v1832_v12 = vld [vmem:[%s4389_s13 + $0x50] sm:$0xff] }
 0x1cd   :  { %v1524_v61 = vpop.f32.mrf.mxu1 }
 0x1ce   :  { %v1544_v52 = vpop.f32.mrf.mxu2  ;;  %v1525_v20 = vadd.f32 %v1524_v61, %v1502_v15 }
 0x1cf   :  { %v1545_v9 = vadd.f32 %v1544_v52, %v1522_v5  ;;  %v1760_v5 = vld [vmem:[%s4388_s10 + $0x8] sm:$0x3] }
 0x1d0   :  { %1932 = vmatpush.msk.msrb.mxu1 %vm1766_vm2, %v1760_v5 }
 0x1d2   :  { %v1567_v57 = vpop.f32.mrf.mxu3 }
 0x1d3   :  { %v1568_v13 = vadd.f32 %v1567_v57, %v1545_v9  ;;  %v1759_v57 = vld [vmem:[%s4388_s10] sm:$0xff]  ;;  %v1835_v9 = vld [vmem:[%s4389_s13 + $0x68] sm:$0xff] }
 0x1d4   :  { %1811 = vmatpush.msrb.mxu1 %v1759_v57 }
 0x1d6   :  { %v1547_v7 = vpop.f32.mrf.mxu2 }
 0x1d7   :  { %v1548_v23 = vadd.f32 %v1547_v7, %v1525_v20  ;;  %v1837_v7 = vld [vmem:[%s4389_s13 + $0x78] sm:$0xff] }
 0x1d8   :  { %1842 = vmatpush.msra.mxu3 %v1837_v7 }
 0x1da   :  { %v1570_v6 = vpop.f32.mrf.mxu3  ;;  %1843 = vmatpush.msra.mxu3 %v1836_v8 }
 0x1db   :  { %v1571_v26 = vadd.f32 %v1570_v6, %v1548_v23  ;;  %v1828_v23 = vld [vmem:[%s4389_s13 + $0x30] sm:$0xff] }
 0x1dc   :  { %1844 = vmatpush.msra.mxu3 %v1835_v9 }
 0x1e5   :  { %v1590_v10 = vpop.f32.mrf.mxu0 }
 0x1e6   :  { %v1591_v16 = vadd.f32 %v1590_v10, %v1568_v13  ;;  %v1834_v10 = vld [vmem:[%s4389_s13 + $0x60] sm:$0xff] }
 0x1e7   :  { %1845 = vmatpush.msra.mxu3 %v1834_v10 }
 0x1e9   :  { %1846 = vmatpush.msra.mxu3 %v1833_v11 }
 0x1ea   :  { %v1613_v60 = vpop.f32.mrf.mxu1 }
 0x1eb   :  { %v1614_v62 = vadd.f32 %v1613_v60, %v1591_v16  ;;  %v1831_v60 = vld [vmem:[%s4389_s13 + $0x48] sm:$0xff]  ;;  %1847 = vmatpush.msra.mxu3 %v1832_v12 }
 0x1ed   :  { %1848 = vmatpush.msra.mxu3 %v1831_v60 }
 0x1ee   :  { %v1593_v24 = vpop.f32.mrf.mxu0 }
 0x1ef   :  { %v1594_v29 = vadd.f32 %v1593_v24, %v1571_v26  ;;  %1849 = vmatpush.msra.mxu3 %v1830_v14  ;;  %v1827_v24 = vld [vmem:[%s4389_s13 + $0x28] sm:$0xff]  ;;  %v1825_v26 = vld [vmem:[%s4389_s13 + $0x18] sm:$0xff] }
 0x1f1   :  { %1850 = vmatpush.msra.mxu3 %v1829_v3 }
 0x1f3   :  { %1851 = vmatpush.msra.mxu3 %v1828_v23 }
 0x1f4   :  { %v1616_v27 = vpop.f32.mrf.mxu1 }
 0x1f5   :  { %v1617_v32 = vadd.f32 %v1616_v27, %v1594_v29  ;;  %1852 = vmatpush.msra.mxu3 %v1827_v24  ;;  %v1824_v27 = vld [vmem:[%s4389_s13 + $0x10] sm:$0xff]  ;;  %v1822_v29 = vld [vmem:[%s4389_s13] sm:$0xff] }
 0x1f7   :  { %1853 = vmatpush.msra.mxu3 %v1826_v25 }
 0x1f9   :  { %1854 = vmatpush.msra.mxu3 %v1825_v26 }
 0x1fb   :  { %1855 = vmatpush.msra.mxu3 %v1824_v27 }
 0x1fd   :  { %1856 = vmatpush.msra.mxu3 %v1823_v28 }
 0x1ff   :  { %1857 = vmatpush.msra.mxu3 %v1822_v29 }
 0x20e   :  { %v1636_v19 = vpop.f32.mrf.mxu2 }
 0x20f   :  { %v1637_v21 = vadd.f32 %v1636_v19, %v1614_v62 }
 0x211   :  { %1993 = vtanh.f32 %v1637_v21 }
 0x217   :  { %v1994_v31 = vpop.eup %1993 }
 0x218   :  { %v1639_v35 = vpop.f32.mrf.mxu2  ;;  %1680 = vmatmul.f32.vlgmr.msrb.gmra.mxu3 %v1994_v31  ;;  %v1877_v31 = vld [vmem:[%s4392_s15 + $0x70] sm:$0xff] }
 0x219   :  { %v1640_v44 = vadd.f32 %v1639_v35, %v1617_v32  ;;  %v1876_v32 = vld [vmem:[%s4392_s15 + $0x68] sm:$0xff]  ;;  %1884 = vmatpush.msra.mxu0 %v1877_v31  ;;  %v1875_v35 = vld [vmem:[%s4392_s15 + $0x60] sm:$0xff] }
 0x21b   :  { %1995 = vtanh.f32 %v1640_v44  ;;  %1885 = vmatpush.msra.mxu0 %v1876_v32  ;;  %v1873_v44 = vld [vmem:[%s4392_s15 + $0x50] sm:$0xff] }
 0x21d   :  { %1886 = vmatpush.msra.mxu0 %v1875_v35 }
 0x21f   :  { %1887 = vmatpush.msra.mxu0 %v1874_v36 }
 0x221   :  { %v1996_v33 = vpop.eup %1995  ;;  %1888 = vmatpush.msra.mxu0 %v1873_v44 }
 0x222   :  { %1683 = vmatmul.f32.gmra.mxu3 %v1996_v33  ;;  %v1872_v33 = vld [vmem:[%s4392_s15 + $0x48] sm:$0xff] }
 0x223   :  { %1889 = vmatpush.msra.mxu0 %v1872_v33 }
 0x225   :  { %1890 = vmatpush.msra.mxu0 %v1871_v37 }
 0x227   :  { %1891 = vmatpush.msra.mxu0 %v1870_v38 }
 0x229   :  { %1892 = vmatpush.msra.mxu0 %v1869_v39 }
 0x29b   :  { %v1681_v34 = vpop.f32.mrf.mxu3 }
 0x29c   :  { %v1682_v49 = vadd.f32 %v1936_v40, %v1681_v34  ;;  %v1868_v34 = vld [vmem:[%s4392_s15 + $0x28] sm:$0xff] }
 0x29d   :  { %1893 = vmatpush.msra.mxu0 %v1868_v34 }
 0x29e   :  { %v1687_v41 = vmax.f32 %v1682_v49, 0.0  ;;  %v1867_v49 = vld [vmem:[%s4392_s15 + $0x20] sm:$0xff] }
 0x29f   :  { %1894 = vmatpush.msra.mxu0 %v1867_v49 }
 0x2a0   :  { %1725 = vmatmul.f32.vlgmr.msra.gmra.mxu2 %v1687_v41  ;;  %v1866_v41 = vld [vmem:[%s4392_s15 + $0x18] sm:$0xff] }
 0x2a1   :  { %1895 = vmatpush.msra.mxu0 %v1866_v41 }
 0x2a5   :  { %v1684_v43 = vpop.f32.mrf.mxu3 }
 0x2a6   :  { %v1685_v45 = vadd.f32 %v1936_v40, %v1684_v43  ;;  %v1938_v43 = vld [vmem:[%s4390_s12] ss:$0 sm:$0xff] }
 0x2a8   :  { %v1688_v18 = vmax.f32 %v1685_v45, 0.0 }
 0x2aa   :  { %1728 = vmatmul.f32.gmra.mxu2 %v1688_v18 }
 0x323   :  { %v1726_v47 = vpop.f32.mrf.mxu2 }
 0x324   :  { %v1727_v22 = vadd.f32 %v1937_v48, %v1726_v47 }
 0x326   :  { %v1733_v52 = vsel %vm1732_vm1, %v1727_v22, -inf }
 0x32d   :  { %v1729_v50 = vpop.f32.mrf.mxu2 }
 0x32e   :  { %v1730_v51 = vadd.f32 %v1937_v48, %v1729_v50  ;;  %v1865_v50 = vld [vmem:[%s4392_s15 + $0x10] sm:$0xff] }
 0x32f   :  { %1896 = vmatpush.msra.mxu0 %v1865_v50 }
 0x330   :  { %v1736_v42 = vsel %vm1732_vm1, %v1730_v51, -inf }
 0x331   :  { %1737 = vmax.xlane.f32.xlu0 %v1736_v42  ;;  %v1863_v42 = vld [vmem:[%s4392_s15] sm:$0xff] }
 0x339   :  { %1734 = vmax.xlane.f32.xlu0 %v1733_v52  ;;  %v1939_v52 = vld [vmem:[%s4391_s14] ss:$0 sm:$0xff] }
 0x3a4   :  { %v1738_v46 = vpop.xlane.xlu0 %1737 }
 0x3a5   :  { %v1740_v55 = vsub.f32 %v1730_v51, %v1738_v46 }
 0x3a7   :  { %v1743_v56 = vmul.f32 1.442695, %v1740_v55 }
 0x3a9   :  { %1997 = vpow2.f32 %v1743_v56 }
 0x3ac   :  { %v1735_v58 = vpop.xlane.xlu0 %1734 }
 0x3ad   :  { %v1739_v59 = vsub.f32 %v1727_v22, %v1735_v58 }
 0x3af   :  { %v1998_v61 = vpop.eup %1997  ;;  %v1741_v63 = vmul.f32 1.442695, %v1739_v59 }
 0x3b0   :  { %v1748_v0 = vsel %vm1732_vm1, %v1998_v61, 0.0 }
 0x3b1   :  { %1999 = vpow2.f32 %v1741_v63  ;;  %1749 = vadd.xlane.f32.xlu1 %v1748_v0 }
 0x3b7   :  { %v2000_v1 = vpop.eup %1999 }
 0x3b8   :  { %v1745_v2 = vsel %vm1732_vm1, %v2000_v1, 0.0 }
 0x3b9   :  { %1746 = vadd.xlane.f32.xlu1 %v1745_v2 }
 0x424   :  { %v1750_v13 = vpop.xlane.xlu1 %1749 }
 0x425   :  { %2001 = vlog2.f32 %v1750_v13 }
 0x42b   :  { %v2002_v15 = vpop.eup %2001 }
 0x42c   :  { %v1754_v16 = vmul.f32 0.6931472, %v2002_v15  ;;  %v1747_v17 = vpop.xlane.xlu1 %1746 }
 0x42d   :  { %2003 = vlog2.f32 %v1747_v17 }
 0x42e   :  { %v1756_v62 = vadd.f32 %v1754_v16, %v1738_v46 }
 0x430   :  { %v1758_v19 = vsub.f32 %v1730_v51, %v1756_v62  ;;  %v1864_v51 = vld [vmem:[%s4392_s15 + $0x8] sm:$0xff] }
 0x431   :  { %1897 = vmatpush.msra.mxu0 %v1864_v51 }
 0x432   :  { %1931 = vmatmul.msk.f32.vlgmr.msra.gmra.mxu1 %vm1732_vm1, %v1758_v19 }
 0x433   :  { %v2004_v54 = vpop.eup %2003  ;;  %1898 = vmatpush.msra.mxu0 %v1863_v42 }
 0x434   :  { %v1752_v20 = vmul.f32 0.6931472, %v2004_v54 }
 0x436   :  { %v1755_v21 = vadd.f32 %v1752_v20, %v1735_v58 }
 0x438   :  { %v1757_v6 = vsub.f32 %v1727_v22, %v1755_v21  ;;  %v22_v22 = vstv %s4393_s16 }
 0x439   :  { %23 = vst [vmem:[#allocation2] sm:$0x1] %v22_v22 }
 0x43a   :  { %1933 = vmatmul.msk.f32.vlgmr.msrb.gmra.mxu1 %vm1732_vm1, %v1757_v6 }
 0x440   :  { %v1940_v56 = vld [vmem:[#allocation2] ss:$0 sm:$0xff] }
 0x4af   :  { %v1787_v40 = vpop.f32.mrf.mxu1 }
 0x4b7   :  { %v1813_v45 = vpop.f32.mrf.mxu1 }
 0x4b8   :  { %v1814_v18 = vadd.f32 %v1813_v45, %v1787_v40 }
 0x4ba   :  { %v1820_v47 = vadd.f32 %v1938_v43, %v1814_v18 }
 0x4bc   :  { %v1821_v48 = vmax.f32 %v1820_v47, 0.0 }
 0x4be   :  { %1858 = vmatmul.f32.vlgmr.msra.gmra.mxu3 %v1821_v48 }
 0x541   :  { %v1859_v53 = vpop.f32.mrf.mxu3 }
 0x542   :  { %v1860_v46 = vadd.f32 %v1939_v52, %v1859_v53 }
 0x544   :  { %v1862_v55 = vmax.f32 %v1860_v46, 0.0 }
 0x546   :  { %1899 = vmatmul.f32.vlgmr.msra.gmra.mxu0 %v1862_v55 }
 0x5c3   :  { %v1900_v58 = vpop.f32.mrf.mxu0 }
 0x5c4   :  { %v1901_v59 = vadd.f32 %v1940_v56, %v1900_v58 }
 0x5c6   :  { %v1934_v61 = vmul.f32 -1.442695, %v1901_v59 }
 0x5c8   :  { %2005 = vpow2.f32 %v1934_v61 }
 0x5ce   :  { %v2006_v63 = vpop.eup %2005 }
 0x5cf   :  { %v1906_v0 = vadd.f32 1.0, %v2006_v63 }
 0x5d1   :  { %2007 = vrcp.f32 %v1906_v0  ;;  %v1918_v5 = vand.u32 2147483648, %v1906_v0  ;;  %v1916_v7 = vand.u32 2147483647, %v1906_v0  ;;  %vm1912_vm4 = vweird.f32 %v1906_v0 }
 0x5d3   :  { %v1919_v9 = vor.u32 1.1754944e-38, %v1918_v5  ;;  %vm1917_vm7 = vcmp.eq.f32.partialorder %v1916_v7, 8.507059e+37 }
 0x5d7   :  { %v2008_v1 = vpop.eup %2007 }
 0x5d8   :  { %v1908_v2 = vmul.f32 %v2008_v1, %v1906_v0  ;;  %vm1913_vm3 = vweird.f32 %v2008_v1 }
 0x5d9   :  { %vm1914_vm5 = vmor %vm1912_vm4, %vm1913_vm3 }
 0x5da   :  { %v1909_v4 = vsub.f32 1.0, %v1908_v2 }
 0x5dc   :  { %v1910_v57 = vmul.f32 %v2008_v1, %v1909_v4 }
 0x5de   :  { %v1911_v8 = vadd.f32 %v2008_v1, %v1910_v57 }
 0x5e0   :  { %v1915_v10 = vsel %vm1914_vm5, %v2008_v1, %v1911_v8 }
 0x5e1   :  { %v1920_v11 = vsel %vm1917_vm7, %v1919_v9, %v1915_v10 }
 0x5e2   :  { %1923 = vst.msk [vmem:[%s4394_s17] sm:$0xff] %vm1922_vm6, %v1920_v11 }

</bundles_post_ra>
